<compile_context>
chip_gen: v6e
topology: v6e:2x2x1
jax: 0.10.0
libtpu: 0.0.40
codegen_flags: <defaults>
</compile_context>

<pallas_src>
import jax
import jax.numpy as jnp
from jax import lax
from jax.experimental import pallas as pl
from jax.experimental.pallas import tpu as pltpu

# ----------------------------- sizes (small stand-ins) -----------------------
B = 2        # batch
B_PAD = 8    # sublane-padded batch
S = 8        # sequence length (77 in the real model)
V = 20       # vocab size (size_question)
V_PAD = 32   # vocab padded for a dense one-hot matmul
E = 32       # word-embedding dim (300 in reference)
H = 128      # GRU hidden / attention dim (1024 in reference)
F_DIM = 256  # f_fc1 hidden dim (2048 in reference)


# ----------------------------- fused kernel ----------------------------------
def type_attention_kernel(
    tok_ref,                                   # [S*B_PAD, 1] int32
    emb_ref,                                   # [V_PAD, E]  bf16
    wih_ref, whh_ref, bih_ref, bhh_ref,        # [E,3H] bf16, [H,3H] bf16, [1,3H] f32 x2
    wtw_ref, wtq_ref, bt_ref,                  # [E,H] bf16, [H,H] bf16, [1,H] f32
    wsw_ref, wsq_ref, bs_ref,                  # [E,H] bf16, [H,H] bf16, [1,H] f32
    wa_ref, ba_ref,                            # [1,H] f32, [1,1] f32
    w1_ref, b1_ref, w2_ref, b2_ref, w3_ref, b3_ref,
    out_ref,                                   # [B_PAD, H] f32
    gx_scr,                                    # VMEM [S*B_PAD, 3H] f32
    q_scr,                                     # VMEM [S*B_PAD, H] f32
):
    f32 = jnp.float32
    bf16 = jnp.bfloat16
    n_rows = S * B_PAD
    hid = H

    # ---- WordEmbedding: gather fused in-kernel as a one-hot matmul ----------
    tok = tok_ref[...]                                                    # [n_rows, 1]
    vocab = lax.broadcasted_iota(jnp.int32, (n_rows, V_PAD), 1)
    onehot = jnp.where(tok == vocab, 1.0, 0.0).astype(bf16)               # [n_rows, V_PAD]
    w_emb = jnp.dot(onehot, emb_ref[...], preferred_element_type=f32)     # [n_rows, E]
    w_emb_bf = w_emb.astype(bf16)

    # ---- GRU (QuestionEmbedding.forward_all) --------------------------------
    # Hoisted input-side matmul: one big [S*B_PAD, E] @ [E, 3H]; bih folded in.
    gx_scr[...] = (jnp.dot(w_emb_bf, wih_ref[...], preferred_element_type=f32)
                   + bih_ref[...])                                         # [n_rows, 3H]
    whh = whh_ref[...]                                                     # bf16 [H, 3H]
    bhh = bhh_ref[...]                                                     # f32  [1, 3H]

    h = jnp.zeros((B_PAD, hid), f32)
    for t in range(S):                                                     # static unroll
        r0 = t * B_PAD
        gx_t = gx_scr[r0:r0 + B_PAD, :]                                    # [B_PAD, 3H]
        gh = jnp.dot(h.astype(bf16), whh, preferred_element_type=f32) + bhh
        # PyTorch GRU gate order: r, z, n   (gate math kept in f32)
        r = jax.nn.sigmoid(gx_t[:, 0 * hid:1 * hid] + gh[:, 0 * hid:1 * hid])
        z = jax.nn.sigmoid(gx_t[:, 1 * hid:2 * hid] + gh[:, 1 * hid:2 * hid])
        n = jnp.tanh(gx_t[:, 2 * hid:3 * hid] + r * gh[:, 2 * hid:3 * hid])
        h = (1.0 - z) * n + z * h
        q_scr[r0:r0 + B_PAD, :] = h

    # ---- QuestionAttention: gated tanh/sigmoid + softmax over S -------------
    q2d = q_scr[...]                                                       # [n_rows, H]
    q2d_bf = q2d.astype(bf16)
    pre_t = (jnp.dot(w_emb_bf, wtw_ref[...], preferred_element_type=f32)
             + jnp.dot(q2d_bf, wtq_ref[...], preferred_element_type=f32)
             + bt_ref[...])
    pre_s = (jnp.dot(w_emb_bf, wsw_ref[...], preferred_element_type=f32)
             + jnp.dot(q2d_bf, wsq_ref[...], preferred_element_type=f32)
             + bs_ref[...])
    g = jnp.tanh(pre_t) * jax.nn.sigmoid(pre_s)                            # [n_rows, H]

    g3 = g.reshape(S, B_PAD, hid)                                          # leading-dim split
    wa3 = wa_ref[...].reshape(1, 1, hid)
    logits = jnp.sum(g3 * wa3, axis=-1, keepdims=True) + ba_ref[...]       # [S, B_PAD, 1]
    m = jnp.max(logits, axis=0, keepdims=True)
    ex = jnp.exp(logits - m)
    attn = ex / jnp.sum(ex, axis=0, keepdims=True)                         # [S, B_PAD, 1]

    # ques_attn = bmm(attn, q_emb) as a VPU weighted sum (no M=1 MXU dots)
    q3 = q2d.reshape(S, B_PAD, hid)
    ques = jnp.sum(attn * q3, axis=0)                                      # [B_PAD, H]

    # ---- MLP head: fc1 -> relu -> fc2 -> (dropout) -> relu -> fc3 -----------
    h1 = jnp.maximum(
        jnp.dot(ques.astype(bf16), w1_ref[...], preferred_element_type=f32)
        + b1_ref[...], 0.0)
    h2 = (jnp.dot(h1.astype(bf16), w2_ref[...], preferred_element_type=f32)
          + b2_ref[...])
    # TODO(synk): reference uses F.dropout with default training=True; PyTorch RNG is
    # not reproducible here, so dropout is applied as identity (eval semantics).
    h2 = jnp.maximum(h2, 0.0)
    out_ref[...] = (jnp.dot(h2.astype(bf16), w3_ref[...], preferred_element_type=f32)
                    + b3_ref[...])


def _fused_call():
    vmem = pl.BlockSpec(memory_space=pltpu.MemorySpace.VMEM)
    return pl.pallas_call(
        type_attention_kernel,
        out_shape=jax.ShapeDtypeStruct((B_PAD, H), jnp.float32),
        in_specs=[vmem] * 20,
        out_specs=vmem,
        scratch_shapes=[
            pltpu.VMEM((S * B_PAD, 3 * H), jnp.float32),   # gx_all
            pltpu.VMEM((S * B_PAD, H), jnp.float32),       # all GRU hidden states
        ],
    )


# ----------------------------- parameter init --------------------------------
def xavier_uniform(key, out_dim, in_dim):
    limit = (6.0 / (in_dim + out_dim)) ** 0.5
    return jax.random.uniform(key, (out_dim, in_dim), jnp.float32, -limit, limit)


def init_params(key):
    ks = jax.random.split(key, 12)
    bf16 = jnp.bfloat16
    p = {}

    # WordEmbedding (synthetic GloVe stand-in), padded to V_PAD rows
    emb = 0.1 * jax.random.normal(ks[0], (V, E), jnp.float32)
    p["emb"] = jnp.zeros((V_PAD, E), jnp.float32).at[:V].set(emb).astype(bf16)

    # GRU(E -> H), PyTorch init: U(-1/sqrt(H), 1/sqrt(H)), gate order (r, z, n)
    k = 1.0 / (H ** 0.5)
    wih = jax.random.uniform(ks[1], (3 * H, E), jnp.float32, -k, k)
    whh = jax.random.uniform(ks[2], (3 * H, H), jnp.float32, -k, k)
    bih = jax.random.uniform(ks[3], (3 * H,), jnp.float32, -k, k)
    bhh = jax.random.uniform(ks[4], (3 * H,), jnp.float32, -k, k)
    p["wih_t"] = wih.T.astype(bf16)                 # [E, 3H]
    p["whh_t"] = whh.T.astype(bf16)                 # [H, 3H]
    p["bih"] = bih.reshape(1, 3 * H)                # f32
    p["bhh"] = bhh.reshape(1, 3 * H)                # f32

    # QuestionAttention(H): tanh_gate / sigmoid_gate: Linear(E+H, H), attn: Linear(H, 1)
    wt = xavier_uniform(ks[5], H, E + H)
    ws = xavier_uniform(ks[6], H, E + H)
    p["wtw"] = wt[:, :E].T.astype(bf16)             # [E, H]
    p["wtq"] = wt[:, E:].T.astype(bf16)             # [H, H]
    p["bt"] = jnp.zeros((1, H), jnp.float32)
    p["wsw"] = ws[:, :E].T.astype(bf16)
    p["wsq"] = ws[:, E:].T.astype(bf16)
    p["bs"] = jnp.zeros((1, H), jnp.float32)
    p["wa"] = xavier_uniform(ks[7], 1, H)           # [1, H] f32 (used on VPU)
    p["ba"] = jnp.zeros((1, 1), jnp.float32)

    # MLP head
    p["w1"] = xavier_uniform(ks[8], F_DIM, H).T.astype(bf16)   # [H, F]
    p["b1"] = jnp.zeros((1, F_DIM), jnp.float32)
    p["w2"] = xavier_uniform(ks[9], H, F_DIM).T.astype(bf16)   # [F, H]
    p["b2"] = jnp.zeros((1, H), jnp.float32)
    p["w3"] = xavier_uniform(ks[10], H, H).T.astype(bf16)      # [H, H]
    p["b3"] = jnp.zeros((1, H), jnp.float32)
    return p


# ----------------------------- full forward ----------------------------------
@jax.jit
def type_attention_forward(question, params):
    # reference: question = question[0]
    tok = question[0]                                               # [B, S] int32
    nb = tok.shape[0]
    # time-major, batch padded to 8 sublanes, flattened row ids (tiny int prep)
    tok_pad = jnp.zeros((S, B_PAD), jnp.int32).at[:, :nb].set(tok.T)
    tok_flat = tok_pad.reshape(S * B_PAD, 1)

    out_pad = _fused_call()(
        tok_flat, params["emb"],
        params["wih_t"], params["whh_t"], params["bih"], params["bhh"],
        params["wtw"], params["wtq"], params["bt"],
        params["wsw"], params["wsq"], params["bs"],
        params["wa"], params["ba"],
        params["w1"], params["b1"], params["w2"], params["b2"],
        params["w3"], params["b3"])
    return out_pad[:nb]                                             # [B, H]


if __name__ == "__main__":
    key = jax.random.PRNGKey(0)
    k_tok, k_par = jax.random.split(key)
    # question tensor: [2, B, S] int32 token ids (forward uses index 0)
    question = jax.random.randint(k_tok, (2, B, S), 0, V, dtype=jnp.int32)
    params = init_params(k_par)

    out = type_attention_forward(question, params)
    out = jax.block_until_ready(out)
    assert out.shape == (B, H) and out.dtype == jnp.float32
    assert bool(jnp.all(jnp.isfinite(out)))
    print("KERNEL_OK")
</pallas_src>

<mosaic_0001>
module attributes {stable_mosaic.version = 11 : i64} {
  func.func @type_attention_kernel(%arg0: memref<64x1xi32, #tpu.memory_space<vmem>>, %arg1: memref<32x32xbf16, #tpu.memory_space<vmem>>, %arg2: memref<32x384xbf16, #tpu.memory_space<vmem>>, %arg3: memref<128x384xbf16, #tpu.memory_space<vmem>>, %arg4: memref<1x384xf32, #tpu.memory_space<vmem>>, %arg5: memref<1x384xf32, #tpu.memory_space<vmem>>, %arg6: memref<32x128xbf16, #tpu.memory_space<vmem>>, %arg7: memref<128x128xbf16, #tpu.memory_space<vmem>>, %arg8: memref<1x128xf32, #tpu.memory_space<vmem>>, %arg9: memref<32x128xbf16, #tpu.memory_space<vmem>>, %arg10: memref<128x128xbf16, #tpu.memory_space<vmem>>, %arg11: memref<1x128xf32, #tpu.memory_space<vmem>>, %arg12: memref<1x128xf32, #tpu.memory_space<vmem>>, %arg13: memref<1x1xf32, #tpu.memory_space<vmem>>, %arg14: memref<128x256xbf16, #tpu.memory_space<vmem>>, %arg15: memref<1x256xf32, #tpu.memory_space<vmem>>, %arg16: memref<256x128xbf16, #tpu.memory_space<vmem>>, %arg17: memref<1x128xf32, #tpu.memory_space<vmem>>, %arg18: memref<128x128xbf16, #tpu.memory_space<vmem>>, %arg19: memref<1x128xf32, #tpu.memory_space<vmem>>, %arg20: memref<8x128xf32, #tpu.memory_space<vmem>>, %arg21: memref<64x384xf32, #tpu.memory_space<vmem>>, %arg22: memref<64x128xf32, #tpu.memory_space<vmem>>) attributes {dimension_semantics = [], scalar_prefetch = 0 : i64, scratch_operands = 2 : i64, tpu.core_type = #tpu.core_type<tc>} {
    %c0 = arith.constant 0 : index
    %c0_0 = arith.constant 0 : index
    %0 = vector.load %arg0[%c0, %c0_0] : memref<64x1xi32, #tpu.memory_space<vmem>>, vector<64x1xi32>
    %1 = tpu.iota {dimensions = array<i32: 1>} : vector<64x32xi32>
    %2 = vector.broadcast %0 : vector<64x1xi32> to vector<64x32xi32>
    %3 = arith.cmpi eq, %2, %1 : vector<64x32xi32>
    %cst = arith.constant 1.000000e+00 : f32
    %cst_1 = arith.constant 0.000000e+00 : f32
    %4 = vector.broadcast %cst : f32 to vector<64x32xf32>
    %5 = vector.broadcast %cst_1 : f32 to vector<64x32xf32>
    %6 = arith.select %3, %4, %5 : vector<64x32xi1>, vector<64x32xf32>
    %7 = arith.truncf %6 : vector<64x32xf32> to vector<64x32xbf16>
    %c0_2 = arith.constant 0 : index
    %c0_3 = arith.constant 0 : index
    %8 = vector.load %arg1[%c0_2, %c0_3] : memref<32x32xbf16, #tpu.memory_space<vmem>>, vector<32x32xbf16>
    %cst_4 = arith.constant dense<0.000000e+00> : vector<64x32xf32>
    %9 = tpu.matmul %7, %8, %cst_4 {dimension_numbers = #tpu.dot_dimension_numbers<[1], [0], [0], [1], [0, 0, 1, 1], [], []>} : vector<64x32xbf16>, vector<32x32xbf16>, vector<64x32xf32> -> vector<64x32xf32>
    %10 = arith.truncf %9 : vector<64x32xf32> to vector<64x32xbf16>
    %c0_5 = arith.constant 0 : index
    %c0_6 = arith.constant 0 : index
    %11 = vector.load %arg2[%c0_5, %c0_6] : memref<32x384xbf16, #tpu.memory_space<vmem>>, vector<32x384xbf16>
    %cst_7 = arith.constant dense<0.000000e+00> : vector<64x384xf32>
    %12 = tpu.matmul %10, %11, %cst_7 {dimension_numbers = #tpu.dot_dimension_numbers<[1], [0], [0], [1], [0, 0, 1, 1], [], []>} : vector<64x32xbf16>, vector<32x384xbf16>, vector<64x384xf32> -> vector<64x384xf32>
    %c0_8 = arith.constant 0 : index
    %c0_9 = arith.constant 0 : index
    %13 = vector.load %arg4[%c0_8, %c0_9] : memref<1x384xf32, #tpu.memory_space<vmem>>, vector<1x384xf32>
    %14 = vector.broadcast %13 : vector<1x384xf32> to vector<64x384xf32>
    %15 = arith.addf %12, %14 : vector<64x384xf32>
    %c0_10 = arith.constant 0 : index
    %c0_11 = arith.constant 0 : index
    %16 = vector.load %arg21[%c0_10, %c0_11] : memref<64x384xf32, #tpu.memory_space<vmem>>, vector<64x384xf32>
    tpu.vector_store %arg21[%c0_10, %c0_11], %15 {strides = array<i32>} : memref<64x384xf32, #tpu.memory_space<vmem>>, vector<64x384xf32>,
    %c0_12 = arith.constant 0 : index
    %c0_13 = arith.constant 0 : index
    %17 = vector.load %arg3[%c0_12, %c0_13] : memref<128x384xbf16, #tpu.memory_space<vmem>>, vector<128x384xbf16>
    %c0_14 = arith.constant 0 : index
    %c0_15 = arith.constant 0 : index
    %18 = vector.load %arg5[%c0_14, %c0_15] : memref<1x384xf32, #tpu.memory_space<vmem>>, vector<1x384xf32>
    %cst_16 = arith.constant 0.000000e+00 : f32
    %19 = vector.broadcast %cst_16 : f32 to vector<8x128xf32>
    %c0_17 = arith.constant 0 : index
    %c0_18 = arith.constant 0 : index
    %20 = vector.load %arg21[%c0_17, %c0_18] : memref<64x384xf32, #tpu.memory_space<vmem>>, vector<8x384xf32>
    %21 = arith.truncf %19 : vector<8x128xf32> to vector<8x128xbf16>
    %cst_19 = arith.constant dense<0.000000e+00> : vector<8x384xf32>
    %22 = tpu.matmul %21, %17, %cst_19 {dimension_numbers = #tpu.dot_dimension_numbers<[1], [0], [0], [1], [0, 0, 1, 1], [], []>} : vector<8x128xbf16>, vector<128x384xbf16>, vector<8x384xf32> -> vector<8x384xf32>
    %23 = vector.broadcast %18 : vector<1x384xf32> to vector<8x384xf32>
    %24 = arith.addf %22, %23 : vector<8x384xf32>
    %25 = vector.extract_strided_slice %20 {offsets = [0, 0], sizes = [8, 128], strides = [1, 1]} : vector<8x384xf32> to vector<8x128xf32>
    %26 = vector.extract_strided_slice %24 {offsets = [0, 0], sizes = [8, 128], strides = [1, 1]} : vector<8x384xf32> to vector<8x128xf32>
    %27 = arith.addf %25, %26 : vector<8x128xf32>
    %28 = arith.negf %27 : vector<8x128xf32>
    %29 = math.exp %28 : vector<8x128xf32>
    %cst_20 = arith.constant 1.000000e+00 : f32
    %30 = vector.broadcast %cst_20 : f32 to vector<8x128xf32>
    %31 = arith.addf %30, %29 : vector<8x128xf32>
    %32 = arith.divf %30, %31 : vector<8x128xf32>
    %33 = vector.extract_strided_slice %20 {offsets = [0, 128], sizes = [8, 128], strides = [1, 1]} : vector<8x384xf32> to vector<8x128xf32>
    %34 = vector.extract_strided_slice %24 {offsets = [0, 128], sizes = [8, 128], strides = [1, 1]} : vector<8x384xf32> to vector<8x128xf32>
    %35 = arith.addf %33, %34 : vector<8x128xf32>
    %36 = arith.negf %35 : vector<8x128xf32>
    %37 = math.exp %36 : vector<8x128xf32>
    %cst_21 = arith.constant 1.000000e+00 : f32
    %38 = vector.broadcast %cst_21 : f32 to vector<8x128xf32>
    %39 = arith.addf %38, %37 : vector<8x128xf32>
    %40 = arith.divf %38, %39 : vector<8x128xf32>
    %41 = vector.extract_strided_slice %20 {offsets = [0, 256], sizes = [8, 128], strides = [1, 1]} : vector<8x384xf32> to vector<8x128xf32>
    %42 = vector.extract_strided_slice %24 {offsets = [0, 256], sizes = [8, 128], strides = [1, 1]} : vector<8x384xf32> to vector<8x128xf32>
    %43 = arith.mulf %32, %42 : vector<8x128xf32>
    %44 = arith.addf %41, %43 : vector<8x128xf32>
    %45 = math.tanh %44 : vector<8x128xf32>
    %cst_22 = arith.constant 1.000000e+00 : f32
    %46 = vector.broadcast %cst_22 : f32 to vector<8x128xf32>
    %47 = arith.subf %46, %40 : vector<8x128xf32>
    %48 = arith.mulf %47, %45 : vector<8x128xf32>
    %49 = arith.mulf %40, %19 : vector<8x128xf32>
    %50 = arith.addf %48, %49 : vector<8x128xf32>
    %c0_23 = arith.constant 0 : index
    %c0_24 = arith.constant 0 : index
    %51 = vector.load %arg22[%c0_23, %c0_24] : memref<64x128xf32, #tpu.memory_space<vmem>>, vector<8x128xf32>
    tpu.vector_store %arg22[%c0_23, %c0_24], %50 {strides = array<i32>} : memref<64x128xf32, #tpu.memory_space<vmem>>, vector<8x128xf32>,
    %c8 = arith.constant 8 : index
    %c0_25 = arith.constant 0 : index
    %52 = vector.load %arg21[%c8, %c0_25] : memref<64x384xf32, #tpu.memory_space<vmem>>, vector<8x384xf32>
    %53 = arith.truncf %50 : vector<8x128xf32> to vector<8x128xbf16>
    %cst_26 = arith.constant dense<0.000000e+00> : vector<8x384xf32>
    %54 = tpu.matmul %53, %17, %cst_26 {dimension_numbers = #tpu.dot_dimension_numbers<[1], [0], [0], [1], [0, 0, 1, 1], [], []>} : vector<8x128xbf16>, vector<128x384xbf16>, vector<8x384xf32> -> vector<8x384xf32>
    %55 = vector.broadcast %18 : vector<1x384xf32> to vector<8x384xf32>
    %56 = arith.addf %54, %55 : vector<8x384xf32>
    %57 = vector.extract_strided_slice %52 {offsets = [0, 0], sizes = [8, 128], strides = [1, 1]} : vector<8x384xf32> to vector<8x128xf32>
    %58 = vector.extract_strided_slice %56 {offsets = [0, 0], sizes = [8, 128], strides = [1, 1]} : vector<8x384xf32> to vector<8x128xf32>
    %59 = arith.addf %57, %58 : vector<8x128xf32>
    %60 = arith.negf %59 : vector<8x128xf32>
    %61 = math.exp %60 : vector<8x128xf32>
    %cst_27 = arith.constant 1.000000e+00 : f32
    %62 = vector.broadcast %cst_27 : f32 to vector<8x128xf32>
    %63 = arith.addf %62, %61 : vector<8x128xf32>
    %64 = arith.divf %62, %63 : vector<8x128xf32>
    %65 = vector.extract_strided_slice %52 {offsets = [0, 128], sizes = [8, 128], strides = [1, 1]} : vector<8x384xf32> to vector<8x128xf32>
    %66 = vector.extract_strided_slice %56 {offsets = [0, 128], sizes = [8, 128], strides = [1, 1]} : vector<8x384xf32> to vector<8x128xf32>
    %67 = arith.addf %65, %66 : vector<8x128xf32>
    %68 = arith.negf %67 : vector<8x128xf32>
    %69 = math.exp %68 : vector<8x128xf32>
    %cst_28 = arith.constant 1.000000e+00 : f32
    %70 = vector.broadcast %cst_28 : f32 to vector<8x128xf32>
    %71 = arith.addf %70, %69 : vector<8x128xf32>
    %72 = arith.divf %70, %71 : vector<8x128xf32>
    %73 = vector.extract_strided_slice %52 {offsets = [0, 256], sizes = [8, 128], strides = [1, 1]} : vector<8x384xf32> to vector<8x128xf32>
    %74 = vector.extract_strided_slice %56 {offsets = [0, 256], sizes = [8, 128], strides = [1, 1]} : vector<8x384xf32> to vector<8x128xf32>
    %75 = arith.mulf %64, %74 : vector<8x128xf32>
    %76 = arith.addf %73, %75 : vector<8x128xf32>
    %77 = math.tanh %76 : vector<8x128xf32>
    %cst_29 = arith.constant 1.000000e+00 : f32
    %78 = vector.broadcast %cst_29 : f32 to vector<8x128xf32>
    %79 = arith.subf %78, %72 : vector<8x128xf32>
    %80 = arith.mulf %79, %77 : vector<8x128xf32>
    %81 = arith.mulf %72, %50 : vector<8x128xf32>
    %82 = arith.addf %80, %81 : vector<8x128xf32>
    %c8_30 = arith.constant 8 : index
    %c0_31 = arith.constant 0 : index
    %83 = vector.load %arg22[%c8_30, %c0_31] : memref<64x128xf32, #tpu.memory_space<vmem>>, vector<8x128xf32>
    tpu.vector_store %arg22[%c8_30, %c0_31], %82 {strides = array<i32>} : memref<64x128xf32, #tpu.memory_space<vmem>>, vector<8x128xf32>,
    %c16 = arith.constant 16 : index
    %c0_32 = arith.constant 0 : index
    %84 = vector.load %arg21[%c16, %c0_32] : memref<64x384xf32, #tpu.memory_space<vmem>>, vector<8x384xf32>
    %85 = arith.truncf %82 : vector<8x128xf32> to vector<8x128xbf16>
    %cst_33 = arith.constant dense<0.000000e+00> : vector<8x384xf32>
    %86 = tpu.matmul %85, %17, %cst_33 {dimension_numbers = #tpu.dot_dimension_numbers<[1], [0], [0], [1], [0, 0, 1, 1], [], []>} : vector<8x128xbf16>, vector<128x384xbf16>, vector<8x384xf32> -> vector<8x384xf32>
    %87 = vector.broadcast %18 : vector<1x384xf32> to vector<8x384xf32>
    %88 = arith.addf %86, %87 : vector<8x384xf32>
    %89 = vector.extract_strided_slice %84 {offsets = [0, 0], sizes = [8, 128], strides = [1, 1]} : vector<8x384xf32> to vector<8x128xf32>
    %90 = vector.extract_strided_slice %88 {offsets = [0, 0], sizes = [8, 128], strides = [1, 1]} : vector<8x384xf32> to vector<8x128xf32>
    %91 = arith.addf %89, %90 : vector<8x128xf32>
    %92 = arith.negf %91 : vector<8x128xf32>
    %93 = math.exp %92 : vector<8x128xf32>
    %cst_34 = arith.constant 1.000000e+00 : f32
    %94 = vector.broadcast %cst_34 : f32 to vector<8x128xf32>
    %95 = arith.addf %94, %93 : vector<8x128xf32>
    %96 = arith.divf %94, %95 : vector<8x128xf32>
    %97 = vector.extract_strided_slice %84 {offsets = [0, 128], sizes = [8, 128], strides = [1, 1]} : vector<8x384xf32> to vector<8x128xf32>
    %98 = vector.extract_strided_slice %88 {offsets = [0, 128], sizes = [8, 128], strides = [1, 1]} : vector<8x384xf32> to vector<8x128xf32>
    %99 = arith.addf %97, %98 : vector<8x128xf32>
    %100 = arith.negf %99 : vector<8x128xf32>
    %101 = math.exp %100 : vector<8x128xf32>
    %cst_35 = arith.constant 1.000000e+00 : f32
    %102 = vector.broadcast %cst_35 : f32 to vector<8x128xf32>
    %103 = arith.addf %102, %101 : vector<8x128xf32>
    %104 = arith.divf %102, %103 : vector<8x128xf32>
    %105 = vector.extract_strided_slice %84 {offsets = [0, 256], sizes = [8, 128], strides = [1, 1]} : vector<8x384xf32> to vector<8x128xf32>
    %106 = vector.extract_strided_slice %88 {offsets = [0, 256], sizes = [8, 128], strides = [1, 1]} : vector<8x384xf32> to vector<8x128xf32>
    %107 = arith.mulf %96, %106 : vector<8x128xf32>
    %108 = arith.addf %105, %107 : vector<8x128xf32>
    %109 = math.tanh %108 : vector<8x128xf32>
    %cst_36 = arith.constant 1.000000e+00 : f32
    %110 = vector.broadcast %cst_36 : f32 to vector<8x128xf32>
    %111 = arith.subf %110, %104 : vector<8x128xf32>
    %112 = arith.mulf %111, %109 : vector<8x128xf32>
    %113 = arith.mulf %104, %82 : vector<8x128xf32>
    %114 = arith.addf %112, %113 : vector<8x128xf32>
    %c16_37 = arith.constant 16 : index
    %c0_38 = arith.constant 0 : index
    %115 = vector.load %arg22[%c16_37, %c0_38] : memref<64x128xf32, #tpu.memory_space<vmem>>, vector<8x128xf32>
    tpu.vector_store %arg22[%c16_37, %c0_38], %114 {strides = array<i32>} : memref<64x128xf32, #tpu.memory_space<vmem>>, vector<8x128xf32>,
    %c24 = arith.constant 24 : index
    %c0_39 = arith.constant 0 : index
    %116 = vector.load %arg21[%c24, %c0_39] : memref<64x384xf32, #tpu.memory_space<vmem>>, vector<8x384xf32>
    %117 = arith.truncf %114 : vector<8x128xf32> to vector<8x128xbf16>
    %cst_40 = arith.constant dense<0.000000e+00> : vector<8x384xf32>
    %118 = tpu.matmul %117, %17, %cst_40 {dimension_numbers = #tpu.dot_dimension_numbers<[1], [0], [0], [1], [0, 0, 1, 1], [], []>} : vector<8x128xbf16>, vector<128x384xbf16>, vector<8x384xf32> -> vector<8x384xf32>
    %119 = vector.broadcast %18 : vector<1x384xf32> to vector<8x384xf32>
    %120 = arith.addf %118, %119 : vector<8x384xf32>
    %121 = vector.extract_strided_slice %116 {offsets = [0, 0], sizes = [8, 128], strides = [1, 1]} : vector<8x384xf32> to vector<8x128xf32>
    %122 = vector.extract_strided_slice %120 {offsets = [0, 0], sizes = [8, 128], strides = [1, 1]} : vector<8x384xf32> to vector<8x128xf32>
    %123 = arith.addf %121, %122 : vector<8x128xf32>
    %124 = arith.negf %123 : vector<8x128xf32>
    %125 = math.exp %124 : vector<8x128xf32>
    %cst_41 = arith.constant 1.000000e+00 : f32
    %126 = vector.broadcast %cst_41 : f32 to vector<8x128xf32>
    %127 = arith.addf %126, %125 : vector<8x128xf32>
    %128 = arith.divf %126, %127 : vector<8x128xf32>
    %129 = vector.extract_strided_slice %116 {offsets = [0, 128], sizes = [8, 128], strides = [1, 1]} : vector<8x384xf32> to vector<8x128xf32>
    %130 = vector.extract_strided_slice %120 {offsets = [0, 128], sizes = [8, 128], strides = [1, 1]} : vector<8x384xf32> to vector<8x128xf32>
    %131 = arith.addf %129, %130 : vector<8x128xf32>
    %132 = arith.negf %131 : vector<8x128xf32>
    %133 = math.exp %132 : vector<8x128xf32>
    %cst_42 = arith.constant 1.000000e+00 : f32
    %134 = vector.broadcast %cst_42 : f32 to vector<8x128xf32>
    %135 = arith.addf %134, %133 : vector<8x128xf32>
    %136 = arith.divf %134, %135 : vector<8x128xf32>
    %137 = vector.extract_strided_slice %116 {offsets = [0, 256], sizes = [8, 128], strides = [1, 1]} : vector<8x384xf32> to vector<8x128xf32>
    %138 = vector.extract_strided_slice %120 {offsets = [0, 256], sizes = [8, 128], strides = [1, 1]} : vector<8x384xf32> to vector<8x128xf32>
    %139 = arith.mulf %128, %138 : vector<8x128xf32>
    %140 = arith.addf %137, %139 : vector<8x128xf32>
    %141 = math.tanh %140 : vector<8x128xf32>
    %cst_43 = arith.constant 1.000000e+00 : f32
    %142 = vector.broadcast %cst_43 : f32 to vector<8x128xf32>
    %143 = arith.subf %142, %136 : vector<8x128xf32>
    %144 = arith.mulf %143, %141 : vector<8x128xf32>
    %145 = arith.mulf %136, %114 : vector<8x128xf32>
    %146 = arith.addf %144, %145 : vector<8x128xf32>
    %c24_44 = arith.constant 24 : index
    %c0_45 = arith.constant 0 : index
    %147 = vector.load %arg22[%c24_44, %c0_45] : memref<64x128xf32, #tpu.memory_space<vmem>>, vector<8x128xf32>
    tpu.vector_store %arg22[%c24_44, %c0_45], %146 {strides = array<i32>} : memref<64x128xf32, #tpu.memory_space<vmem>>, vector<8x128xf32>,
    %c32 = arith.constant 32 : index
    %c0_46 = arith.constant 0 : index
    %148 = vector.load %arg21[%c32, %c0_46] : memref<64x384xf32, #tpu.memory_space<vmem>>, vector<8x384xf32>
    %149 = arith.truncf %146 : vector<8x128xf32> to vector<8x128xbf16>
    %cst_47 = arith.constant dense<0.000000e+00> : vector<8x384xf32>
    %150 = tpu.matmul %149, %17, %cst_47 {dimension_numbers = #tpu.dot_dimension_numbers<[1], [0], [0], [1], [0, 0, 1, 1], [], []>} : vector<8x128xbf16>, vector<128x384xbf16>, vector<8x384xf32> -> vector<8x384xf32>
    %151 = vector.broadcast %18 : vector<1x384xf32> to vector<8x384xf32>
    %152 = arith.addf %150, %151 : vector<8x384xf32>
    %153 = vector.extract_strided_slice %148 {offsets = [0, 0], sizes = [8, 128], strides = [1, 1]} : vector<8x384xf32> to vector<8x128xf32>
    %154 = vector.extract_strided_slice %152 {offsets = [0, 0], sizes = [8, 128], strides = [1, 1]} : vector<8x384xf32> to vector<8x128xf32>
    %155 = arith.addf %153, %154 : vector<8x128xf32>
    %156 = arith.negf %155 : vector<8x128xf32>
    %157 = math.exp %156 : vector<8x128xf32>
    %cst_48 = arith.constant 1.000000e+00 : f32
    %158 = vector.broadcast %cst_48 : f32 to vector<8x128xf32>
    %159 = arith.addf %158, %157 : vector<8x128xf32>
    %160 = arith.divf %158, %159 : vector<8x128xf32>
    %161 = vector.extract_strided_slice %148 {offsets = [0, 128], sizes = [8, 128], strides = [1, 1]} : vector<8x384xf32> to vector<8x128xf32>
    %162 = vector.extract_strided_slice %152 {offsets = [0, 128], sizes = [8, 128], strides = [1, 1]} : vector<8x384xf32> to vector<8x128xf32>
    %163 = arith.addf %161, %162 : vector<8x128xf32>
    %164 = arith.negf %163 : vector<8x128xf32>
    %165 = math.exp %164 : vector<8x128xf32>
    %cst_49 = arith.constant 1.000000e+00 : f32
    %166 = vector.broadcast %cst_49 : f32 to vector<8x128xf32>
    %167 = arith.addf %166, %165 : vector<8x128xf32>
    %168 = arith.divf %166, %167 : vector<8x128xf32>
    %169 = vector.extract_strided_slice %148 {offsets = [0, 256], sizes = [8, 128], strides = [1, 1]} : vector<8x384xf32> to vector<8x128xf32>
    %170 = vector.extract_strided_slice %152 {offsets = [0, 256], sizes = [8, 128], strides = [1, 1]} : vector<8x384xf32> to vector<8x128xf32>
    %171 = arith.mulf %160, %170 : vector<8x128xf32>
    %172 = arith.addf %169, %171 : vector<8x128xf32>
    %173 = math.tanh %172 : vector<8x128xf32>
    %cst_50 = arith.constant 1.000000e+00 : f32
    %174 = vector.broadcast %cst_50 : f32 to vector<8x128xf32>
    %175 = arith.subf %174, %168 : vector<8x128xf32>
    %176 = arith.mulf %175, %173 : vector<8x128xf32>
    %177 = arith.mulf %168, %146 : vector<8x128xf32>
    %178 = arith.addf %176, %177 : vector<8x128xf32>
    %c32_51 = arith.constant 32 : index
    %c0_52 = arith.constant 0 : index
    %179 = vector.load %arg22[%c32_51, %c0_52] : memref<64x128xf32, #tpu.memory_space<vmem>>, vector<8x128xf32>
    tpu.vector_store %arg22[%c32_51, %c0_52], %178 {strides = array<i32>} : memref<64x128xf32, #tpu.memory_space<vmem>>, vector<8x128xf32>,
    %c40 = arith.constant 40 : index
    %c0_53 = arith.constant 0 : index
    %180 = vector.load %arg21[%c40, %c0_53] : memref<64x384xf32, #tpu.memory_space<vmem>>, vector<8x384xf32>
    %181 = arith.truncf %178 : vector<8x128xf32> to vector<8x128xbf16>
    %cst_54 = arith.constant dense<0.000000e+00> : vector<8x384xf32>
    %182 = tpu.matmul %181, %17, %cst_54 {dimension_numbers = #tpu.dot_dimension_numbers<[1], [0], [0], [1], [0, 0, 1, 1], [], []>} : vector<8x128xbf16>, vector<128x384xbf16>, vector<8x384xf32> -> vector<8x384xf32>
    %183 = vector.broadcast %18 : vector<1x384xf32> to vector<8x384xf32>
    %184 = arith.addf %182, %183 : vector<8x384xf32>
    %185 = vector.extract_strided_slice %180 {offsets = [0, 0], sizes = [8, 128], strides = [1, 1]} : vector<8x384xf32> to vector<8x128xf32>
    %186 = vector.extract_strided_slice %184 {offsets = [0, 0], sizes = [8, 128], strides = [1, 1]} : vector<8x384xf32> to vector<8x128xf32>
    %187 = arith.addf %185, %186 : vector<8x128xf32>
    %188 = arith.negf %187 : vector<8x128xf32>
    %189 = math.exp %188 : vector<8x128xf32>
    %cst_55 = arith.constant 1.000000e+00 : f32
    %190 = vector.broadcast %cst_55 : f32 to vector<8x128xf32>
    %191 = arith.addf %190, %189 : vector<8x128xf32>
    %192 = arith.divf %190, %191 : vector<8x128xf32>
    %193 = vector.extract_strided_slice %180 {offsets = [0, 128], sizes = [8, 128], strides = [1, 1]} : vector<8x384xf32> to vector<8x128xf32>
    %194 = vector.extract_strided_slice %184 {offsets = [0, 128], sizes = [8, 128], strides = [1, 1]} : vector<8x384xf32> to vector<8x128xf32>
    %195 = arith.addf %193, %194 : vector<8x128xf32>
    %196 = arith.negf %195 : vector<8x128xf32>
    %197 = math.exp %196 : vector<8x128xf32>
    %cst_56 = arith.constant 1.000000e+00 : f32
    %198 = vector.broadcast %cst_56 : f32 to vector<8x128xf32>
    %199 = arith.addf %198, %197 : vector<8x128xf32>
    %200 = arith.divf %198, %199 : vector<8x128xf32>
    %201 = vector.extract_strided_slice %180 {offsets = [0, 256], sizes = [8, 128], strides = [1, 1]} : vector<8x384xf32> to vector<8x128xf32>
    %202 = vector.extract_strided_slice %184 {offsets = [0, 256], sizes = [8, 128], strides = [1, 1]} : vector<8x384xf32> to vector<8x128xf32>
    %203 = arith.mulf %192, %202 : vector<8x128xf32>
    %204 = arith.addf %201, %203 : vector<8x128xf32>
    %205 = math.tanh %204 : vector<8x128xf32>
    %cst_57 = arith.constant 1.000000e+00 : f32
    %206 = vector.broadcast %cst_57 : f32 to vector<8x128xf32>
    %207 = arith.subf %206, %200 : vector<8x128xf32>
    %208 = arith.mulf %207, %205 : vector<8x128xf32>
    %209 = arith.mulf %200, %178 : vector<8x128xf32>
    %210 = arith.addf %208, %209 : vector<8x128xf32>
    %c40_58 = arith.constant 40 : index
    %c0_59 = arith.constant 0 : index
    %211 = vector.load %arg22[%c40_58, %c0_59] : memref<64x128xf32, #tpu.memory_space<vmem>>, vector<8x128xf32>
    tpu.vector_store %arg22[%c40_58, %c0_59], %210 {strides = array<i32>} : memref<64x128xf32, #tpu.memory_space<vmem>>, vector<8x128xf32>,
    %c48 = arith.constant 48 : index
    %c0_60 = arith.constant 0 : index
    %212 = vector.load %arg21[%c48, %c0_60] : memref<64x384xf32, #tpu.memory_space<vmem>>, vector<8x384xf32>
    %213 = arith.truncf %210 : vector<8x128xf32> to vector<8x128xbf16>
    %cst_61 = arith.constant dense<0.000000e+00> : vector<8x384xf32>
    %214 = tpu.matmul %213, %17, %cst_61 {dimension_numbers = #tpu.dot_dimension_numbers<[1], [0], [0], [1], [0, 0, 1, 1], [], []>} : vector<8x128xbf16>, vector<128x384xbf16>, vector<8x384xf32> -> vector<8x384xf32>
    %215 = vector.broadcast %18 : vector<1x384xf32> to vector<8x384xf32>
    %216 = arith.addf %214, %215 : vector<8x384xf32>
    %217 = vector.extract_strided_slice %212 {offsets = [0, 0], sizes = [8, 128], strides = [1, 1]} : vector<8x384xf32> to vector<8x128xf32>
    %218 = vector.extract_strided_slice %216 {offsets = [0, 0], sizes = [8, 128], strides = [1, 1]} : vector<8x384xf32> to vector<8x128xf32>
    %219 = arith.addf %217, %218 : vector<8x128xf32>
    %220 = arith.negf %219 : vector<8x128xf32>
    %221 = math.exp %220 : vector<8x128xf32>
    %cst_62 = arith.constant 1.000000e+00 : f32
    %222 = vector.broadcast %cst_62 : f32 to vector<8x128xf32>
    %223 = arith.addf %222, %221 : vector<8x128xf32>
    %224 = arith.divf %222, %223 : vector<8x128xf32>
    %225 = vector.extract_strided_slice %212 {offsets = [0, 128], sizes = [8, 128], strides = [1, 1]} : vector<8x384xf32> to vector<8x128xf32>
    %226 = vector.extract_strided_slice %216 {offsets = [0, 128], sizes = [8, 128], strides = [1, 1]} : vector<8x384xf32> to vector<8x128xf32>
    %227 = arith.addf %225, %226 : vector<8x128xf32>
    %228 = arith.negf %227 : vector<8x128xf32>
    %229 = math.exp %228 : vector<8x128xf32>
    %cst_63 = arith.constant 1.000000e+00 : f32
    %230 = vector.broadcast %cst_63 : f32 to vector<8x128xf32>
    %231 = arith.addf %230, %229 : vector<8x128xf32>
    %232 = arith.divf %230, %231 : vector<8x128xf32>
    %233 = vector.extract_strided_slice %212 {offsets = [0, 256], sizes = [8, 128], strides = [1, 1]} : vector<8x384xf32> to vector<8x128xf32>
    %234 = vector.extract_strided_slice %216 {offsets = [0, 256], sizes = [8, 128], strides = [1, 1]} : vector<8x384xf32> to vector<8x128xf32>
    %235 = arith.mulf %224, %234 : vector<8x128xf32>
    %236 = arith.addf %233, %235 : vector<8x128xf32>
    %237 = math.tanh %236 : vector<8x128xf32>
    %cst_64 = arith.constant 1.000000e+00 : f32
    %238 = vector.broadcast %cst_64 : f32 to vector<8x128xf32>
    %239 = arith.subf %238, %232 : vector<8x128xf32>
    %240 = arith.mulf %239, %237 : vector<8x128xf32>
    %241 = arith.mulf %232, %210 : vector<8x128xf32>
    %242 = arith.addf %240, %241 : vector<8x128xf32>
    %c48_65 = arith.constant 48 : index
    %c0_66 = arith.constant 0 : index
    %243 = vector.load %arg22[%c48_65, %c0_66] : memref<64x128xf32, #tpu.memory_space<vmem>>, vector<8x128xf32>
    tpu.vector_store %arg22[%c48_65, %c0_66], %242 {strides = array<i32>} : memref<64x128xf32, #tpu.memory_space<vmem>>, vector<8x128xf32>,
    %c56 = arith.constant 56 : index
    %c0_67 = arith.constant 0 : index
    %244 = vector.load %arg21[%c56, %c0_67] : memref<64x384xf32, #tpu.memory_space<vmem>>, vector<8x384xf32>
    %245 = arith.truncf %242 : vector<8x128xf32> to vector<8x128xbf16>
    %cst_68 = arith.constant dense<0.000000e+00> : vector<8x384xf32>
    %246 = tpu.matmul %245, %17, %cst_68 {dimension_numbers = #tpu.dot_dimension_numbers<[1], [0], [0], [1], [0, 0, 1, 1], [], []>} : vector<8x128xbf16>, vector<128x384xbf16>, vector<8x384xf32> -> vector<8x384xf32>
    %247 = vector.broadcast %18 : vector<1x384xf32> to vector<8x384xf32>
    %248 = arith.addf %246, %247 : vector<8x384xf32>
    %249 = vector.extract_strided_slice %244 {offsets = [0, 0], sizes = [8, 128], strides = [1, 1]} : vector<8x384xf32> to vector<8x128xf32>
    %250 = vector.extract_strided_slice %248 {offsets = [0, 0], sizes = [8, 128], strides = [1, 1]} : vector<8x384xf32> to vector<8x128xf32>
    %251 = arith.addf %249, %250 : vector<8x128xf32>
    %252 = arith.negf %251 : vector<8x128xf32>
    %253 = math.exp %252 : vector<8x128xf32>
    %cst_69 = arith.constant 1.000000e+00 : f32
    %254 = vector.broadcast %cst_69 : f32 to vector<8x128xf32>
    %255 = arith.addf %254, %253 : vector<8x128xf32>
    %256 = arith.divf %254, %255 : vector<8x128xf32>
    %257 = vector.extract_strided_slice %244 {offsets = [0, 128], sizes = [8, 128], strides = [1, 1]} : vector<8x384xf32> to vector<8x128xf32>
    %258 = vector.extract_strided_slice %248 {offsets = [0, 128], sizes = [8, 128], strides = [1, 1]} : vector<8x384xf32> to vector<8x128xf32>
    %259 = arith.addf %257, %258 : vector<8x128xf32>
    %260 = arith.negf %259 : vector<8x128xf32>
    %261 = math.exp %260 : vector<8x128xf32>
    %cst_70 = arith.constant 1.000000e+00 : f32
    %262 = vector.broadcast %cst_70 : f32 to vector<8x128xf32>
    %263 = arith.addf %262, %261 : vector<8x128xf32>
    %264 = arith.divf %262, %263 : vector<8x128xf32>
    %265 = vector.extract_strided_slice %244 {offsets = [0, 256], sizes = [8, 128], strides = [1, 1]} : vector<8x384xf32> to vector<8x128xf32>
    %266 = vector.extract_strided_slice %248 {offsets = [0, 256], sizes = [8, 128], strides = [1, 1]} : vector<8x384xf32> to vector<8x128xf32>
    %267 = arith.mulf %256, %266 : vector<8x128xf32>
    %268 = arith.addf %265, %267 : vector<8x128xf32>
    %269 = math.tanh %268 : vector<8x128xf32>
    %cst_71 = arith.constant 1.000000e+00 : f32
    %270 = vector.broadcast %cst_71 : f32 to vector<8x128xf32>
    %271 = arith.subf %270, %264 : vector<8x128xf32>
    %272 = arith.mulf %271, %269 : vector<8x128xf32>
    %273 = arith.mulf %264, %242 : vector<8x128xf32>
    %274 = arith.addf %272, %273 : vector<8x128xf32>
    %c56_72 = arith.constant 56 : index
    %c0_73 = arith.constant 0 : index
    %275 = vector.load %arg22[%c56_72, %c0_73] : memref<64x128xf32, #tpu.memory_space<vmem>>, vector<8x128xf32>
    tpu.vector_store %arg22[%c56_72, %c0_73], %274 {strides = array<i32>} : memref<64x128xf32, #tpu.memory_space<vmem>>, vector<8x128xf32>,
    %c0_74 = arith.constant 0 : index
    %c0_75 = arith.constant 0 : index
    %276 = vector.load %arg22[%c0_74, %c0_75] : memref<64x128xf32, #tpu.memory_space<vmem>>, vector<64x128xf32>
    %277 = arith.truncf %276 : vector<64x128xf32> to vector<64x128xbf16>
    %c0_76 = arith.constant 0 : index
    %c0_77 = arith.constant 0 : index
    %278 = vector.load %arg6[%c0_76, %c0_77] : memref<32x128xbf16, #tpu.memory_space<vmem>>, vector<32x128xbf16>
    %cst_78 = arith.constant dense<0.000000e+00> : vector<64x128xf32>
    %279 = tpu.matmul %10, %278, %cst_78 {dimension_numbers = #tpu.dot_dimension_numbers<[1], [0], [0], [1], [0, 0, 1, 1], [], []>} : vector<64x32xbf16>, vector<32x128xbf16>, vector<64x128xf32> -> vector<64x128xf32>
    %c0_79 = arith.constant 0 : index
    %c0_80 = arith.constant 0 : index
    %280 = vector.load %arg7[%c0_79, %c0_80] : memref<128x128xbf16, #tpu.memory_space<vmem>>, vector<128x128xbf16>
    %cst_81 = arith.constant dense<0.000000e+00> : vector<64x128xf32>
    %281 = tpu.matmul %277, %280, %cst_81 {dimension_numbers = #tpu.dot_dimension_numbers<[1], [0], [0], [1], [0, 0, 1, 1], [], []>} : vector<64x128xbf16>, vector<128x128xbf16>, vector<64x128xf32> -> vector<64x128xf32>
    %282 = arith.addf %279, %281 : vector<64x128xf32>
    %c0_82 = arith.constant 0 : index
    %c0_83 = arith.constant 0 : index
    %283 = vector.load %arg8[%c0_82, %c0_83] : memref<1x128xf32, #tpu.memory_space<vmem>>, vector<1x128xf32>
    %284 = vector.broadcast %283 : vector<1x128xf32> to vector<64x128xf32>
    %285 = arith.addf %282, %284 : vector<64x128xf32>
    %c0_84 = arith.constant 0 : index
    %c0_85 = arith.constant 0 : index
    %286 = vector.load %arg9[%c0_84, %c0_85] : memref<32x128xbf16, #tpu.memory_space<vmem>>, vector<32x128xbf16>
    %cst_86 = arith.constant dense<0.000000e+00> : vector<64x128xf32>
    %287 = tpu.matmul %10, %286, %cst_86 {dimension_numbers = #tpu.dot_dimension_numbers<[1], [0], [0], [1], [0, 0, 1, 1], [], []>} : vector<64x32xbf16>, vector<32x128xbf16>, vector<64x128xf32> -> vector<64x128xf32>
    %c0_87 = arith.constant 0 : index
    %c0_88 = arith.constant 0 : index
    %288 = vector.load %arg10[%c0_87, %c0_88] : memref<128x128xbf16, #tpu.memory_space<vmem>>, vector<128x128xbf16>
    %cst_89 = arith.constant dense<0.000000e+00> : vector<64x128xf32>
    %289 = tpu.matmul %277, %288, %cst_89 {dimension_numbers = #tpu.dot_dimension_numbers<[1], [0], [0], [1], [0, 0, 1, 1], [], []>} : vector<64x128xbf16>, vector<128x128xbf16>, vector<64x128xf32> -> vector<64x128xf32>
    %290 = arith.addf %287, %289 : vector<64x128xf32>
    %c0_90 = arith.constant 0 : index
    %c0_91 = arith.constant 0 : index
    %291 = vector.load %arg11[%c0_90, %c0_91] : memref<1x128xf32, #tpu.memory_space<vmem>>, vector<1x128xf32>
    %292 = vector.broadcast %291 : vector<1x128xf32> to vector<64x128xf32>
    %293 = arith.addf %290, %292 : vector<64x128xf32>
    %294 = math.tanh %285 : vector<64x128xf32>
    %295 = arith.negf %293 : vector<64x128xf32>
    %296 = math.exp %295 : vector<64x128xf32>
    %cst_92 = arith.constant 1.000000e+00 : f32
    %297 = vector.broadcast %cst_92 : f32 to vector<64x128xf32>
    %298 = arith.addf %297, %296 : vector<64x128xf32>
    %299 = arith.divf %297, %298 : vector<64x128xf32>
    %300 = arith.mulf %294, %299 : vector<64x128xf32>
    %301 = vector.shape_cast %300 : vector<64x128xf32> to vector<8x8x128xf32>
    %c0_93 = arith.constant 0 : index
    %c0_94 = arith.constant 0 : index
    %302 = vector.load %arg12[%c0_93, %c0_94] : memref<1x128xf32, #tpu.memory_space<vmem>>, vector<1x128xf32>
    %303 = vector.shape_cast %302 : vector<1x128xf32> to vector<1x1x128xf32>
    %304 = vector.broadcast %303 : vector<1x1x128xf32> to vector<8x8x128xf32>
    %305 = arith.mulf %301, %304 : vector<8x8x128xf32>
    %cst_95 = arith.constant dense<0.000000e+00> : vector<8x8xf32>
    %306 = vector.multi_reduction <add>, %305, %cst_95 [2] : vector<8x8x128xf32> to vector<8x8xf32>
    %307 = vector.shape_cast %306 : vector<8x8xf32> to vector<8x8x1xf32>
    %c0_96 = arith.constant 0 : index
    %c0_97 = arith.constant 0 : index
    %308 = vector.load %arg13[%c0_96, %c0_97] : memref<1x1xf32, #tpu.memory_space<vmem>>, vector<1x1xf32>
    %309 = vector.shape_cast %308 : vector<1x1xf32> to vector<1x1x1xf32>
    %310 = vector.broadcast %309 : vector<1x1x1xf32> to vector<8x8x1xf32>
    %311 = arith.addf %307, %310 : vector<8x8x1xf32>
    %cst_98 = arith.constant dense<0xFF800000> : vector<8x1xf32>
    %312 = vector.multi_reduction <maximumf>, %311, %cst_98 [0] : vector<8x8x1xf32> to vector<8x1xf32>
    %313 = vector.shape_cast %312 : vector<8x1xf32> to vector<1x8x1xf32>
    %314 = vector.broadcast %313 : vector<1x8x1xf32> to vector<8x8x1xf32>
    %315 = arith.subf %311, %314 : vector<8x8x1xf32>
    %316 = math.exp %315 : vector<8x8x1xf32>
    %cst_99 = arith.constant dense<0.000000e+00> : vector<8x1xf32>
    %317 = vector.multi_reduction <add>, %316, %cst_99 [0] : vector<8x8x1xf32> to vector<8x1xf32>
    %318 = vector.shape_cast %317 : vector<8x1xf32> to vector<1x8x1xf32>
    %319 = vector.broadcast %318 : vector<1x8x1xf32> to vector<8x8x1xf32>
    %320 = arith.divf %316, %319 : vector<8x8x1xf32>
    %321 = vector.shape_cast %276 : vector<64x128xf32> to vector<8x8x128xf32>
    %322 = vector.broadcast %320 : vector<8x8x1xf32> to vector<8x8x128xf32>
    %323 = arith.mulf %322, %321 : vector<8x8x128xf32>
    %cst_100 = arith.constant dense<0.000000e+00> : vector<8x128xf32>
    %324 = vector.multi_reduction <add>, %323, %cst_100 [0] : vector<8x8x128xf32> to vector<8x128xf32>
    %325 = arith.truncf %324 : vector<8x128xf32> to vector<8x128xbf16>
    %c0_101 = arith.constant 0 : index
    %c0_102 = arith.constant 0 : index
    %326 = vector.load %arg14[%c0_101, %c0_102] : memref<128x256xbf16, #tpu.memory_space<vmem>>, vector<128x256xbf16>
    %cst_103 = arith.constant dense<0.000000e+00> : vector<8x256xf32>
    %327 = tpu.matmul %325, %326, %cst_103 {dimension_numbers = #tpu.dot_dimension_numbers<[1], [0], [0], [1], [0, 0, 1, 1], [], []>} : vector<8x128xbf16>, vector<128x256xbf16>, vector<8x256xf32> -> vector<8x256xf32>
    %c0_104 = arith.constant 0 : index
    %c0_105 = arith.constant 0 : index
    %328 = vector.load %arg15[%c0_104, %c0_105] : memref<1x256xf32, #tpu.memory_space<vmem>>, vector<1x256xf32>
    %329 = vector.broadcast %328 : vector<1x256xf32> to vector<8x256xf32>
    %330 = arith.addf %327, %329 : vector<8x256xf32>
    %cst_106 = arith.constant 0.000000e+00 : f32
    %331 = vector.broadcast %cst_106 : f32 to vector<8x256xf32>
    %332 = arith.maximumf %330, %331 : vector<8x256xf32>
    %333 = arith.truncf %332 : vector<8x256xf32> to vector<8x256xbf16>
    %c0_107 = arith.constant 0 : index
    %c0_108 = arith.constant 0 : index
    %334 = vector.load %arg16[%c0_107, %c0_108] : memref<256x128xbf16, #tpu.memory_space<vmem>>, vector<256x128xbf16>
    %cst_109 = arith.constant dense<0.000000e+00> : vector<8x128xf32>
    %335 = tpu.matmul %333, %334, %cst_109 {dimension_numbers = #tpu.dot_dimension_numbers<[1], [0], [0], [1], [0, 0, 1, 1], [], []>} : vector<8x256xbf16>, vector<256x128xbf16>, vector<8x128xf32> -> vector<8x128xf32>
    %c0_110 = arith.constant 0 : index
    %c0_111 = arith.constant 0 : index
    %336 = vector.load %arg17[%c0_110, %c0_111] : memref<1x128xf32, #tpu.memory_space<vmem>>, vector<1x128xf32>
    %337 = vector.broadcast %336 : vector<1x128xf32> to vector<8x128xf32>
    %338 = arith.addf %335, %337 : vector<8x128xf32>
    %cst_112 = arith.constant 0.000000e+00 : f32
    %339 = vector.broadcast %cst_112 : f32 to vector<8x128xf32>
    %340 = arith.maximumf %338, %339 : vector<8x128xf32>
    %341 = arith.truncf %340 : vector<8x128xf32> to vector<8x128xbf16>
    %c0_113 = arith.constant 0 : index
    %c0_114 = arith.constant 0 : index
    %342 = vector.load %arg18[%c0_113, %c0_114] : memref<128x128xbf16, #tpu.memory_space<vmem>>, vector<128x128xbf16>
    %cst_115 = arith.constant dense<0.000000e+00> : vector<8x128xf32>
    %343 = tpu.matmul %341, %342, %cst_115 {dimension_numbers = #tpu.dot_dimension_numbers<[1], [0], [0], [1], [0, 0, 1, 1], [], []>} : vector<8x128xbf16>, vector<128x128xbf16>, vector<8x128xf32> -> vector<8x128xf32>
    %c0_116 = arith.constant 0 : index
    %c0_117 = arith.constant 0 : index
    %344 = vector.load %arg19[%c0_116, %c0_117] : memref<1x128xf32, #tpu.memory_space<vmem>>, vector<1x128xf32>
    %345 = vector.broadcast %344 : vector<1x128xf32> to vector<8x128xf32>
    %346 = arith.addf %343, %345 : vector<8x128xf32>
    %c0_118 = arith.constant 0 : index
    %c0_119 = arith.constant 0 : index
    %347 = vector.load %arg20[%c0_118, %c0_119] : memref<8x128xf32, #tpu.memory_space<vmem>>, vector<8x128xf32>
    tpu.vector_store %arg20[%c0_118, %c0_119], %346 {strides = array<i32>} : memref<8x128xf32, #tpu.memory_space<vmem>>, vector<8x128xf32>,
    return
  }
}

</mosaic_0001>

<bundles_post_ra>
// kernel: type_attention_forward.1
= control target key start
LH: loop header
LB: loop body
LE: loop exit
PB: predicated region body
PF: predicated region fallthrough
CT: control target
= control target key end

     0   :  { %s4871_s0 = inlined_call_operand.vmem [shape: s32[64,1], index: 0, kind: input, shape index: {}]   ;;  %s4872_s1 = inlined_call_operand.hbm [shape: bf16[32,32], index: 1, kind: input, shape index: {}]   ;;  %s4873_s2 = inlined_call_operand.hbm [shape: bf16[32,384], index: 2, kind: input, shape index: {}]   ;;  %s4874_s3 = inlined_call_operand.hbm [shape: bf16[128,384], index: 3, kind: input, shape index: {}]   ;;  %s4875_s4 = inlined_call_operand.hbm [shape: f32[1,384], index: 4, kind: input, shape index: {}]   ;;  %s4876_s5 = inlined_call_operand.hbm [shape: f32[1,384], index: 5, kind: input, shape index: {}]   ;;  %s4877_s6 = inlined_call_operand.hbm [shape: bf16[32,128], index: 6, kind: input, shape index: {}]   ;;  %s4878_s7 = inlined_call_operand.vmem [shape: bf16[128,128], index: 7, kind: input, shape index: {}]   ;;  %s4879_s8 = inlined_call_operand.vmem [shape: f32[1,128], index: 8, kind: input, shape index: {}]   ;;  %s4880_s9 = inlined_call_operand.hbm [shape: bf16[32,128], index: 9, kind: input, shape index: {}]   ;;  %s4881_s10 = inlined_call_operand.vmem [shape: bf16[128,128], index: 10, kind: input, shape index: {}]   ;;  %s4882_s11 = inlined_call_operand.hbm [shape: f32[1,128], index: 11, kind: input, shape index: {}]   ;;  %s4883_s12 = inlined_call_operand.hbm [shape: f32[1,128], index: 12, kind: input, shape index: {}]   ;;  %s4884_s13 = inlined_call_operand.<no memory space> [shape: f32[1,1], index: 13, kind: input, shape index: {}]   ;;  %s4885_s14 = inlined_call_operand.hbm [shape: bf16[128,256], index: 14, kind: input, shape index: {}]   ;;  %s4886_s15 = inlined_call_operand.hbm [shape: f32[1,256], index: 15, kind: input, shape index: {}]   ;;  %s4887_s16 = inlined_call_operand.hbm [shape: bf16[256,128], index: 16, kind: input, shape index: {}]   ;;  %s4888_s17 = inlined_call_operand.hbm [shape: f32[1,128], index: 17, kind: input, shape index: {}]   ;;  %s4889_s18 = inlined_call_operand.hbm [shape: bf16[128,128], index: 18, kind: input, shape index: {}]   ;;  %s4890_s19 = inlined_call_operand.hbm [shape: f32[1,128], index: 19, kind: input, shape index: {}]   ;;  %s4891_s20 = inlined_call_operand.vmem [shape: f32[8,128], index: 20, kind: output, shape index: {}]  }
   0x1   :  { %4908 = sst [smem:[#allocation49_spill]] %s4871_s0  ;;  %v25_v0 = vstv %s4884_s13 }
   0x2   :  { %4909 = sst [smem:[#allocation50_spill]] %s4872_s1  ;;  %26 = vst [vmem:[#allocation4] sm:$0x1] %v25_v0 }
   0x3   :  { %4910 = sst [smem:[#allocation51_spill]] %s4873_s2 }
   0x4   :  { %4911 = sst [smem:[#allocation52_spill]] %s4874_s3 }
   0x5   :  { %4912 = sst [smem:[#allocation53_spill]] %s4875_s4 }
   0x6   :  { %27 = vsyncpa [#allocation6], 0 }
   0x7   :  { %28 = vsyncpa [#allocation8], 0 }
   0x8   :  { %29 = vsyncpa [#allocation11], 0 }
   0x9   :  { %30 = vsyncpa [#allocation14], 0 }
   0xa   :  { %31 = vsyncpa [#allocation17], 0 }
   0xb   :  { %32 = vsyncpa [#allocation20], 0 }
   0xc   :  { %33 = vsyncpa [#allocation23], 0 }
   0xd   :  { %34 = vsyncpa [#allocation26], 0  ;;  %s4009_s23 = smov [#allocation7]  }
   0xe   :  { %s54_s24 = sshll.u32 %s4009_s23, 4  ;;  %s55_s24 = int_to_ptr.vmem [resolvable:$true] %s54_s24 }
   0xf   :  { %s3701_s2 = scalar_lea.vmem %s55_s24, 768  ;;  %p3706_p1 = scmp.lt.s32.totalorder %s55_s24, %s55_s24 }
  0x10   :  { %p3702_p0 = scmp.ne.s32.totalorder %s55_s24, %s3701_s2  ;;  %p3707_p2 = scmp.lt.s32.totalorder %s3701_s2, %s3701_s2 }
  0x12   :  { %p3708_p3 = por %p3707_p2, %p3706_p1 }
  0x14   :  { %p3709_p4 = pnand %p3708_p3, %p3702_p0 }
  0x16   :  { %3712 = shalt.err (!%p3709_p4)
}
  0x17   :  { %s4010_s13 = smov 192   ;;  %s4011_s25 = smov 12  }
  0x18   :  { %s4913_s27 = sld [smem:[#allocation51_spill]]  ;;  %s4012_s28 = smov [#allocation10]  }
  0x19   :  { %s79_s4 = sshll.u32 %s4012_s28, 4  ;;  %s80_s4 = int_to_ptr.vmem [resolvable:$true] %s79_s4 }
  0x1a   :  { %s3721_s29 = scalar_lea.vmem %s80_s4, 48  ;;  %s3725_s30 = scalar_lea.vmem %s80_s4, 64 }
  0x1b   :  { %p3722_p5 = scmp.ne.s32.totalorder %s80_s4, %s3721_s29  ;;  %p3726_p6 = scmp.lt.s32.totalorder %s80_s4, %s80_s4 }
  0x1c   :  { %p3727_p7 = scmp.lt.s32.totalorder %s3725_s30, %s3721_s29 }
  0x1e   :  { %60 = dma.hbm_to_vmem [thread:$0]  %s4913_s27, 768, %s55_s24, [#allocation8], %s4010_s13, %s4010_s13, %s4011_s25  }
  0x1f   :  { %p3728_p8 = por %p3727_p7, %p3726_p6 }
  0x21   :  { %p3729_p9 = pnand %p3728_p8, %p3722_p5 }
  0x23   :  { %3732 = shalt.err (!%p3729_p9)
}
  0x24   :  { %s4914_s1 = sld [smem:[#allocation53_spill]]  ;;  %s4013_s22 = smov [#allocation13]  }
  0x25   :  { %s98_s23 = sshll.u32 %s4013_s22, 4  ;;  %s4014_s2 = smov [#allocation16]   ;;  %s99_s23 = int_to_ptr.vmem [resolvable:$true] %s98_s23 }
  0x26   :  { %s129_s3 = sshll.u32 %s4014_s2, 4  ;;  %s3741_s24 = scalar_lea.vmem %s99_s23, 256  ;;  %s130_s3 = int_to_ptr.vmem [resolvable:$true] %s129_s3 }
  0x27   :  { %p3742_p10 = scmp.ne.s32.totalorder %s99_s23, %s3741_s24  ;;  %p3746_p11 = scmp.lt.s32.totalorder %s99_s23, %s99_s23 }
  0x28   :  { %p3747_p12 = scmp.lt.s32.totalorder %s3741_s24, %s3741_s24 }
  0x2a   :  { %82 = dma.hbm_to_vmem [thread:$0]  %s4914_s1, 48, %s80_s4, [#allocation11]  }
  0x2b   :  { %p3748_p13 = por %p3747_p12, %p3746_p11 }
  0x2d   :  { %p3749_p0 = pnand %p3748_p13, %p3742_p10 }
  0x2f   :  { %3752 = shalt.err (!%p3749_p0)
}
  0x30   :  { %s4015_s26 = smov 64   ;;  %s4016_s27 = smov 4  }
  0x31   :  { %104 = dma.hbm_to_vmem [thread:$0]  %s4877_s6, 256, %s99_s23, [#allocation14], %s4015_s26, %s4015_s26, %s4016_s27  }
  0x32   :  { %s3761_s29 = scalar_lea.vmem %s130_s3, 16  ;;  %s3765_s30 = scalar_lea.vmem %s130_s3, 32 }
  0x33   :  { %p3762_p1 = scmp.ne.s32.totalorder %s130_s3, %s3761_s29  ;;  %p3766_p2 = scmp.lt.s32.totalorder %s130_s3, %s130_s3 }
  0x34   :  { %p3767_p3 = scmp.lt.s32.totalorder %s3765_s30, %s3761_s29 }
  0x36   :  { %p3768_p4 = por %p3767_p3, %p3766_p2 }
  0x38   :  { %p3769_p5 = pnand %p3768_p4, %p3762_p1 }
  0x3a   :  { %3772 = shalt.err (!%p3769_p5)
}
  0x3b   :  { %132 = dma.hbm_to_vmem [thread:$0]  %s4882_s11, 16, %s130_s3, [#allocation17]  }
  0x3c   :  { %s4017_s1 = smov [#allocation19]  }
  0x3d   :  { %s150_s22 = sshll.u32 %s4017_s1, 4  ;;  %s151_s22 = int_to_ptr.vmem [resolvable:$true] %s150_s22 }
  0x3e   :  { %s3781_s2 = scalar_lea.vmem %s151_s22, 2048  ;;  %p3786_p7 = scmp.lt.s32.totalorder %s151_s22, %s151_s22 }
  0x3f   :  { %p3782_p6 = scmp.ne.s32.totalorder %s151_s22, %s3781_s2  ;;  %p3787_p8 = scmp.lt.s32.totalorder %s3781_s2, %s3781_s2 }
  0x41   :  { %p3788_p9 = por %p3787_p8, %p3786_p7 }
  0x43   :  { %p3789_p10 = pnand %p3788_p9, %p3782_p6 }
  0x45   :  { %3792 = shalt.err (!%p3789_p10)
}
  0x46   :  { %s4018_s6 = smov 128   ;;  %s4019_s23 = smov 8  }
  0x47   :  { %156 = dma.hbm_to_vmem [thread:$0]  %s4885_s14, 2048, %s151_s22, [#allocation20], %s4018_s6, %s4018_s6, %s4019_s23  }
  0x48   :  { %s4020_s4 = smov [#allocation22]   ;;  %s4021_s11 = smov [#allocation25]  }
  0x49   :  { %s172_s29 = sshll.u32 %s4020_s4, 4  ;;  %s194_s3 = sshll.u32 %s4021_s11, 4  ;;  %s173_s29 = int_to_ptr.vmem [resolvable:$true] %s172_s29  ;;  %s195_s3 = int_to_ptr.vmem [resolvable:$true] %s194_s3 }
  0x4a   :  { %s3801_s30 = scalar_lea.vmem %s173_s29, 2048  ;;  %p3806_p12 = scmp.lt.s32.totalorder %s173_s29, %s173_s29 }
  0x4b   :  { %p3802_p11 = scmp.ne.s32.totalorder %s173_s29, %s3801_s30  ;;  %p3807_p13 = scmp.lt.s32.totalorder %s3801_s30, %s3801_s30 }
  0x4d   :  { %p3808_p0 = por %p3807_p13, %p3806_p12 }
  0x4f   :  { %p3809_p1 = pnand %p3808_p0, %p3802_p11 }
  0x51   :  { %3812 = shalt.err (!%p3809_p1)
}
  0x52   :  { %178 = dma.hbm_to_vmem [thread:$0]  %s4887_s16, 2048, %s173_s29, [#allocation23], %s4015_s26, %s4015_s26, %s4016_s27  }
  0x53   :  { %s3821_s14 = scalar_lea.vmem %s195_s3, 1024  ;;  %p3826_p3 = scmp.lt.s32.totalorder %s195_s3, %s195_s3 }
  0x54   :  { %p3822_p2 = scmp.ne.s32.totalorder %s195_s3, %s3821_s14  ;;  %p3827_p4 = scmp.lt.s32.totalorder %s3821_s14, %s3821_s14 }
  0x56   :  { %p3828_p5 = por %p3827_p4, %p3826_p3 }
  0x58   :  { %p3829_p6 = pnand %p3828_p5, %p3822_p2 }
  0x5a   :  { %3832 = shalt.err (!%p3829_p6)
}
  0x5b   :  { %200 = dma.hbm_to_vmem [thread:$0]  %s4889_s18, 1024, %s195_s3, [#allocation26], %s4015_s26, %s4015_s26, %s4016_s27  }
  0x5c   :  { %s4022_s2 = smov [#allocation5]   ;;  %s4023_s23 = smov [#allocation9]  }
  0x5d   :  { %s42_s6 = sshll.u32 %s4022_s2, 4  ;;  %s66_s16 = sshll.u32 %s4023_s23, 4  ;;  %s43_s6 = int_to_ptr.vmem [resolvable:$true] %s42_s6  ;;  %s67_s16 = int_to_ptr.vmem [resolvable:$true] %s66_s16 }
  0x5e   :  { %s3841_s24 = scalar_lea.vmem %s43_s6, 256  ;;  %p3846_p8 = scmp.lt.s32.totalorder %s43_s6, %s43_s6 }
  0x5f   :  { %p3842_p7 = scmp.ne.s32.totalorder %s43_s6, %s3841_s24  ;;  %p3847_p9 = scmp.lt.s32.totalorder %s3841_s24, %s3841_s24 }
  0x61   :  { %p3848_p10 = por %p3847_p9, %p3846_p8 }
  0x63   :  { %p3849_p11 = pnand %p3848_p10, %p3842_p7 }
  0x65   :  { %3852 = shalt.err (!%p3849_p11)
}
  0x66   :  { %s4915_s29 = sld [smem:[#allocation50_spill]]  ;;  %s3861_s18 = scalar_lea.vmem %s67_s16, 3072 }
  0x67   :  { %p3862_p12 = scmp.ne.s32.totalorder %s67_s16, %s3861_s18  ;;  %p3866_p13 = scmp.lt.s32.totalorder %s67_s16, %s67_s16 }
  0x68   :  { %p3867_p0 = scmp.lt.s32.totalorder %s3861_s18, %s3861_s18 }
  0x6a   :  { %p3868_p1 = por %p3867_p0, %p3866_p13 }
  0x6c   :  { %48 = dma.hbm_to_vmem [thread:$0]  %s4915_s29, 256, %s43_s6, [#allocation6], %s4015_s26, %s4015_s26, %s4016_s27  }
  0x6d   :  { %p3869_p2 = pnand %p3868_p1, %p3862_p12 }
  0x6f   :  { %3872 = shalt.err (!%p3869_p2)
}
  0x70   :  { %s4916_s30 = sld [smem:[#allocation52_spill]]  ;;  %s4024_s0 = smov [#allocation12]  }
  0x71   :  { %s89_s21 = sshll.u32 %s4024_s0, 4  ;;  %s4025_s14 = smov [#allocation15]   ;;  %s90_s21 = int_to_ptr.vmem [resolvable:$true] %s89_s21 }
  0x72   :  { %s114_s1 = sshll.u32 %s4025_s14, 4  ;;  %s3881_s22 = scalar_lea.vmem %s90_s21, 48  ;;  %s115_s1 = int_to_ptr.vmem [resolvable:$true] %s114_s1 }
  0x73   :  { %p3882_p3 = scmp.ne.s32.totalorder %s90_s21, %s3881_s22  ;;  %s3885_s2 = scalar_lea.vmem %s90_s21, 64 }
  0x74   :  { %p3886_p4 = scmp.lt.s32.totalorder %s90_s21, %s90_s21  ;;  %p3887_p5 = scmp.lt.s32.totalorder %s3885_s2, %s3881_s22 }
  0x76   :  { %72 = dma.hbm_to_vmem [thread:$0]  %s4916_s30, 3072, %s67_s16, [#allocation8], %s4010_s13, %s4010_s13, %s4011_s25  }
  0x77   :  { %p3888_p6 = por %p3887_p5, %p3886_p4 }
  0x79   :  { %p3889_p7 = pnand %p3888_p6, %p3882_p3 }
  0x7b   :  { %3892 = shalt.err (!%p3889_p7)
}
  0x7c   :  { %92 = dma.hbm_to_vmem [thread:$0]  %s4876_s5, 48, %s90_s21, [#allocation11]  }
  0x7d   :  { %s3901_s24 = scalar_lea.vmem %s115_s1, 256  ;;  %p3906_p9 = scmp.lt.s32.totalorder %s115_s1, %s115_s1 }
  0x7e   :  { %p3902_p8 = scmp.ne.s32.totalorder %s115_s1, %s3901_s24  ;;  %p3907_p10 = scmp.lt.s32.totalorder %s3901_s24, %s3901_s24 }
  0x80   :  { %p3908_p11 = por %p3907_p10, %p3906_p9 }
  0x82   :  { %p3909_p12 = pnand %p3908_p11, %p3902_p8 }
  0x84   :  { %3912 = shalt.err (!%p3909_p12)
}
  0x85   :  { %120 = dma.hbm_to_vmem [thread:$0]  %s4880_s9, 256, %s115_s1, [#allocation14], %s4015_s26, %s4015_s26, %s4016_s27  }
  0x86   :  { %s4026_s16 = smov [#allocation18]   ;;  %s4027_s4 = smov [#allocation21]  }
  0x87   :  { %s139_s28 = sshll.u32 %s4026_s16, 4  ;;  %s163_s5 = sshll.u32 %s4027_s4, 4  ;;  %s140_s28 = int_to_ptr.vmem [resolvable:$true] %s139_s28  ;;  %s164_s5 = int_to_ptr.vmem [resolvable:$true] %s163_s5 }
  0x88   :  { %s3921_s29 = scalar_lea.vmem %s140_s28, 16  ;;  %s3925_s18 = scalar_lea.vmem %s140_s28, 32 }
  0x89   :  { %p3922_p13 = scmp.ne.s32.totalorder %s140_s28, %s3921_s29  ;;  %p3926_p0 = scmp.lt.s32.totalorder %s140_s28, %s140_s28 }
  0x8a   :  { %p3927_p1 = scmp.lt.s32.totalorder %s3925_s18, %s3921_s29 }
  0x8c   :  { %p3928_p2 = por %p3927_p1, %p3926_p0 }
  0x8e   :  { %p3929_p3 = pnand %p3928_p2, %p3922_p13 }
  0x90   :  { %3932 = shalt.err (!%p3929_p3)
}
  0x91   :  { %142 = dma.hbm_to_vmem [thread:$0]  %s4883_s12, 16, %s140_s28, [#allocation17]  }
  0x92   :  { %s3941_s30 = scalar_lea.vmem %s164_s5, 32  ;;  %p3946_p5 = scmp.lt.s32.totalorder %s164_s5, %s164_s5 }
  0x93   :  { %p3942_p4 = scmp.ne.s32.totalorder %s164_s5, %s3941_s30  ;;  %p3947_p6 = scmp.lt.s32.totalorder %s3941_s30, %s3941_s30 }
  0x95   :  { %p3948_p7 = por %p3947_p6, %p3946_p5 }
  0x97   :  { %p3949_p8 = pnand %p3948_p7, %p3942_p4 }
  0x99   :  { %3952 = shalt.err (!%p3949_p8)
}
  0x9a   :  { %166 = dma.hbm_to_vmem [thread:$0]  %s4886_s15, 32, %s164_s5, [#allocation20]  }
  0x9b   :  { %s4028_s27 = smov [#allocation24]   ;;  %s4029_s21 = smov [#allocation27]  }
  0x9c   :  { %s185_s0 = sshll.u32 %s4028_s27, 4  ;;  %s207_s14 = sshll.u32 %s4029_s21, 4  ;;  %s186_s0 = int_to_ptr.vmem [resolvable:$true] %s185_s0  ;;  %s208_s14 = int_to_ptr.vmem [resolvable:$true] %s207_s14 }
  0x9d   :  { %s3961_s1 = scalar_lea.vmem %s186_s0, 16  ;;  %s3965_s12 = scalar_lea.vmem %s186_s0, 32 }
  0x9e   :  { %p3962_p9 = scmp.ne.s32.totalorder %s186_s0, %s3961_s1  ;;  %p3966_p10 = scmp.lt.s32.totalorder %s186_s0, %s186_s0 }
  0x9f   :  { %p3967_p11 = scmp.lt.s32.totalorder %s3965_s12, %s3961_s1 }
  0xa1   :  { %p3968_p12 = por %p3967_p11, %p3966_p10 }
  0xa3   :  { %p3969_p13 = pnand %p3968_p12, %p3962_p9 }
  0xa5   :  { %3972 = shalt.err (!%p3969_p13)
}
  0xa6   :  { %188 = dma.hbm_to_vmem [thread:$0]  %s4888_s17, 16, %s186_s0, [#allocation23]  }
  0xa7   :  { %s3981_s6 = scalar_lea.vmem %s208_s14, 16  ;;  %s3985_s15 = scalar_lea.vmem %s208_s14, 32 }
  0xa8   :  { %p3982_p0 = scmp.ne.s32.totalorder %s208_s14, %s3981_s6  ;;  %p3986_p1 = scmp.lt.s32.totalorder %s208_s14, %s208_s14 }
  0xa9   :  { %p3987_p2 = scmp.lt.s32.totalorder %s3985_s15, %s3981_s6 }
  0xab   :  { %p3988_p3 = por %p3987_p2, %p3986_p1 }
  0xad   :  { %p3989_p4 = pnand %p3988_p3, %p3982_p0 }
  0xaf   :  { %3992 = shalt.err (!%p3989_p4)
}
  0xb0   :  { %210 = dma.hbm_to_vmem [thread:$0]  %s4890_s19, 16, %s208_s14, [#allocation26]  }
  0xb1   :  { %3993 = dma.done.wait [#allocation6], 256  }
  0xb2   :  { %3994 = vsyncadd [#allocation6], 4294967040 }
  0xb3   :  { %3995 = dma.done.wait [#allocation8], 3840  }
  0xb4   :  { %3996 = vsyncadd [#allocation8], 4294963456 }
  0xb5   :  { %3997 = dma.done.wait [#allocation11], 96  }
  0xb6   :  { %3998 = vsyncadd [#allocation11], 4294967200 }
  0xb7   :  { %3999 = dma.done.wait [#allocation14], 512  }
  0xb8   :  { %4000 = vsyncadd [#allocation14], 4294966784 }
  0xb9   :  { %4001 = dma.done.wait [#allocation17], 32  }
  0xba   :  { %4002 = vsyncadd [#allocation17], 4294967264 }
  0xbb   :  { %4003 = dma.done.wait [#allocation20], 2080  }
  0xbc   :  { %4004 = vsyncadd [#allocation20], 4294965216 }
  0xbd   :  { %4005 = dma.done.wait [#allocation23], 2064  }
  0xbe   :  { %4006 = vsyncadd [#allocation23], 4294965232 }
  0xbf   :  { %4007 = dma.done.wait [#allocation26], 1040  }
  0xc0   :  { %4008 = vsyncadd [#allocation26], 4294966256  ;;  %v4893_v1 = vmov 0   ;;  %s4917_s13 = sld [smem:[#allocation49_spill]]  ;;  %v3413_v6 = vld [vmem:[#allocation5 + $0x8] sm:$0xff]   ;;  %v3414_v9 = vld [vmem:[#allocation5] sm:$0xff]   ;;  %v265_v12 = vlaneseq }
  0xc1   :  { %3412 = vset.pattern.permute.xlu1 %v4893_v1  ;;  %3411 = vset.pattern.permute.xlu0 %v4893_v1  ;;  %vm327_vm4 = vcmask 261120   ;;  %v4895_v18 = vmov 0.0   ;;  %v3415_v35 = vld [vmem:[#allocation7 + $0x1c] ss:$12 sps:$4 sm:$0xff]   ;;  %v3417_v36 = vld [vmem:[#allocation7 + $0x18] ss:$12 sps:$4 sm:$0xff]  }
  0xc2   :  { %510 = vmatprep.mubr.bf16.mxu1 %v4893_v1  ;;  %3111 = vmatprep.subr.bf16.mxu0 %v3413_v6  ;;  %v266_v13 = vand.u32 127, %v265_v12  ;;  %v3418_v37 = vld [vmem:[#allocation7 + $0x20] ss:$12 sps:$4 sm:$0xff]   ;;  %v3419_v38 = vld [vmem:[#allocation7 + $0x4] ss:$12 sps:$4 sm:$0xff]   ;;  %vm4032_vm9 = vmmov 0  }
  0xc3   :  { %3112 = vmatpush3.bf16.msra.mxu0 %v3413_v6  ;;  %490 = vmatprep.subr.bf16.mxu1 %v3415_v35  ;;  %v3421_v39 = vld [vmem:[#allocation7] ss:$12 sps:$4 sm:$0xff]   ;;  %v3422_v40 = vld [vmem:[#allocation7 + $0x8] ss:$12 sps:$4 sm:$0xff]   ;;  %v4251_v46 = vld [vmem:[#allocation9 + $0xa8] ss:$12 sps:$4 sm:$0xff]  }
  0xc4   :  { %3113 = vmatprep.subr.bf16.mxu0 %v3414_v9  ;;  %491 = vmatpush1.bf16.msra.mxu1 %v3417_v36  ;;  %v4247_v41 = vld [vmem:[#allocation9 + $0xac] ss:$12 sps:$4 sm:$0xff]   ;;  %v4255_v48 = vld [vmem:[#allocation9 + $0x94] ss:$12 sps:$4 sm:$0xff]   ;;  %v4259_v51 = vld [vmem:[#allocation9 + $0xb0] ss:$12 sps:$4 sm:$0xff]  }
  0xc5   :  { %492 = vmatprep.subr.bf16.mxu1 %v3419_v38  ;;  %v4268_v53 = vld [vmem:[#allocation9 + $0x90] ss:$12 sps:$4 sm:$0xff]   ;;  %v4275_v56 = vld [vmem:[#allocation9 + $0x98] ss:$12 sps:$4 sm:$0xff]   ;;  %v4293_v62 = vld [vmem:[#allocation9 + $0x80] ss:$12 sps:$4 sm:$0xff]  }
  0xc6   :  { %v259_v2 = vld [vmem:[%s4917_s13 + $0x10] sm:$0xff]  ;;  %v257_v3 = vld [vmem:[%s4917_s13] sm:$0xff]  ;;  %v260_v4 = vld [vmem:[%s4917_s13 + $0x18] sm:$0xff]  ;;  %vm2244_vm10 = vcmask 7168  }
  0xc7   :  { %274 = vperm.xlu1 %3412, %v259_v2   ;;  %268 = vperm.xlu0 %3411, %v257_v3   ;;  %v258_v5 = vld [vmem:[%s4917_s13 + $0x8] sm:$0xff]  ;;  %v261_v8 = vld [vmem:[%s4917_s13 + $0x20] sm:$0xff]  ;;  %v264_v10 = vld [vmem:[%s4917_s13 + $0x38] sm:$0xff] }
  0xc8   :  { %v262_v7 = vld [vmem:[%s4917_s13 + $0x28] sm:$0xff]  ;;  %v263_v11 = vld [vmem:[%s4917_s13 + $0x30] sm:$0xff]  ;;  %3114 = vmatpush3.bf16.msra.mxu0 %v3414_v9  ;;  %493 = vmatpush1.bf16.msra.mxu1 %v3421_v39 }
  0xc9   :  { %3123 = vmatprep.subr.bf16.mxu0 %v3418_v37  ;;  %820 = vmatprep.subr.bf16.mxu1 %v4247_v41  ;;  %v4272_v54 = vld [vmem:[#allocation9 + $0x7c] ss:$12 sps:$4 sm:$0xff]   ;;  %v4279_v58 = vld [vmem:[#allocation9 + $0x78] ss:$12 sps:$4 sm:$0xff]   ;;  %v4298_v63 = vld [vmem:[#allocation9 + $0x60] ss:$12 sps:$4 sm:$0xff]  }
  0xca   :  { %v4284_v60 = vld [vmem:[#allocation9 + $0x64] ss:$12 sps:$4 sm:$0xff]   ;;  %v4302_v0 = vld [vmem:[#allocation9 + $0x4c] ss:$12 sps:$4 sm:$0xff]   ;;  %v4308_v2 = vld [vmem:[#allocation9 + $0x68] ss:$12 sps:$4 sm:$0xff]  }
  0xcb   :  { %277 = vperm.xlu1 %3412, %v260_v4   ;;  %271 = vperm.xlu0 %3411, %v258_v5   ;;  %v4311_v3 = vld [vmem:[#allocation9 + $0x48] ss:$12 sps:$4 sm:$0xff]   ;;  %v4320_v5 = vld [vmem:[#allocation9 + $0x50] ss:$12 sps:$4 sm:$0xff]   ;;  %v4334_v9 = vld [vmem:[#allocation9 + $0x18] ss:$12 sps:$4 sm:$0xff]  }
  0xcc   :  { %v4315_v4 = vld [vmem:[#allocation9 + $0x34] ss:$12 sps:$4 sm:$0xff]   ;;  %v4323_v6 = vld [vmem:[#allocation9 + $0x30] ss:$12 sps:$4 sm:$0xff]  }
  0xcf   :  { %283 = vperm.xlu1 %3412, %v262_v7   ;;  %280 = vperm.xlu0 %3411, %v261_v8   ;;  %v4327_v7 = vld [vmem:[#allocation9 + $0x1c] ss:$12 sps:$4 sm:$0xff]   ;;  %v4331_v8 = vld [vmem:[#allocation9 + $0x38] ss:$12 sps:$4 sm:$0xff]  }
  0xd3   :  { %289 = vperm.xlu1 %3412, %v264_v10   ;;  %286 = vperm.xlu0 %3411, %v263_v11   ;;  %v4338_v10 = vld [vmem:[#allocation9 + $0x4] ss:$12 sps:$4 sm:$0xff]   ;;  %v4343_v11 = vld [vmem:[#allocation9 + $0x20] ss:$12 sps:$4 sm:$0xff]  }
 0x142   :  { %v275_v14 = vpop.permute.xlu1 %274  ;;  %v269_v15 = vpop.permute.xlu0 %268 }
 0x143   :  { %vm293_vm0 = vcmp.eq.s32.totalorder %v275_v14, %v266_v13  ;;  %vm291_vm1 = vcmp.eq.s32.totalorder %v269_v15, %v266_v13  ;;  %v4352_v14 = vld [vmem:[#allocation9 + $0x8] ss:$12 sps:$4 sm:$0xff]   ;;  %v4397_v15 = vshrl.u32 %v265_v12, 7 }
 0x144   :  { %v301_v19 = vsel %vm293_vm0, 1.0, %v4895_v18  ;;  %v299_v20 = vsel %vm291_vm1, 1.0, %v4895_v18 }
 0x146   :  { %v278_v16 = vpop.permute.xlu1 %277  ;;  %v272_v17 = vpop.permute.xlu0 %271 }
 0x147   :  { %vm294_vm2 = vcmp.eq.s32.totalorder %v278_v16, %v266_v13  ;;  %vm292_vm3 = vcmp.eq.s32.totalorder %v272_v17, %v266_v13  ;;  %v4897_v16 = vsub.s32 2, %v4397_v15  ;;  %v417_v17 = vld [vmem:[#allocation10] sm:$0x7] }
 0x148   :  { %v302_v21 = vsel %vm294_vm2, 1.0, %v4895_v18  ;;  %v300_v22 = vsel %vm292_vm3, 1.0, %v4895_v18 }
 0x149   :  { %v308_v23 = vpack.c.bf16 %v302_v21, %v301_v19  ;;  %v307_v24 = vpack.c.bf16 %v300_v22, %v299_v20  ;;  %v4402_v19 = vrot.slane %v417_v17, %v4897_v16  ;;  %v4405_v20 = vsub.s32 0, %v4397_v15 }
 0x14a   :  { %v284_v25 = vpop.permute.xlu1 %283  ;;  %v281_v26 = vpop.permute.xlu0 %280 }
 0x14b   :  { %vm296_vm5 = vcmp.eq.s32.totalorder %v284_v25, %v266_v13  ;;  %vm295_vm6 = vcmp.eq.s32.totalorder %v281_v26, %v266_v13  ;;  %3115 = vmatprep.mubr.msk.bf16.mxu0 %vm327_vm4, %v307_v24  ;;  %4922 = vst [vmem:[#allocation40_spill] sm:$0xff] %v4405_v20  ;;  %v422_v25 = vrot.slane %v417_v17, %v4405_v20 }
 0x14c   :  { %v304_v27 = vsel %vm296_vm5, 1.0, %v4895_v18  ;;  %v303_v28 = vsel %vm295_vm6, 1.0, %v4895_v18  ;;  %3116 = vmatmul.mubr.msk.bf16.vlgmr.msra.gmra.mxu0 %vm327_vm4, %v308_v23  ;;  %v4408_v23 = vsub.s32 1, %v4397_v15 }
 0x14d   :  { %v309_v29 = vpack.c.bf16 %v304_v27, %v303_v28  ;;  %3124 = vmatpush3.bf16.msra.mxu0 %v3418_v37 }
 0x14e   :  { %v290_v30 = vpop.permute.xlu1 %289  ;;  %v287_v31 = vpop.permute.xlu0 %286  ;;  %3125 = vmatprep.subr.bf16.mxu0 %v3422_v40  ;;  %4923 = vst [vmem:[#allocation41_spill] sm:$0xff] %v4408_v23  ;;  %v426_v28 = vrot.slane %v417_v17, %v4408_v23 }
 0x14f   :  { %vm298_vm7 = vcmp.eq.s32.totalorder %v290_v30, %v266_v13  ;;  %vm297_vm8 = vcmp.eq.s32.totalorder %v287_v31, %v266_v13  ;;  %3119 = vmatprep.mubr.msk.bf16.mxu0 %vm327_vm4, %v309_v29  ;;  %v4346_v13 = vld [vmem:[#allocation9] ss:$12 sps:$4 sm:$0xff]  }
 0x150   :  { %v306_v32 = vsel %vm298_vm7, 1.0, %v4895_v18  ;;  %v305_v33 = vsel %vm297_vm8, 1.0, %v4895_v18 }
 0x151   :  { %v310_v34 = vpack.c.bf16 %v306_v32, %v305_v33  ;;  %3126 = vmatpush3.bf16.msra.mxu0 %v3422_v40 }
 0x152   :  { %3135 = vmatprep.subr.bf16.mxu0 %v4895_v18 }
 0x154   :  { %3120 = vmatmul.mubr.msk.bf16.gmra.mxu0 %vm327_vm4, %v310_v34 }
 0x20c   :  { %v3117_v42 = vpop.f32.mrf.mxu0 }
 0x20e   :  { %v374_v43 = vpop.f32.mrf.mxu0 }
 0x210   :  { %v3118_v44 = vpop.f32.mrf.mxu0 }
 0x211   :  { %v4257_v49 = vpack.c.bf16 %v3118_v44, %v3117_v42 }
 0x212   :  { %v377_v45 = vpop.f32.mrf.mxu0 }
 0x213   :  { %v4253_v47 = vpack.c.bf16 %v377_v45, %v374_v43  ;;  %4919 = vst [vmem:[#allocation37_spill] sm:$0xff] %v4257_v49 }
 0x214   :  { %v3121_v50 = vpop.f32.mrf.mxu0 }
 0x215   :  { %4918 = vst [vmem:[#allocation36_spill] sm:$0xff] %v4253_v47  ;;  %2830 = vmatmul.mubr.msk.bf16.vlgmr.msra.gmra.mxu1 %vm327_vm4, %v4253_v47  ;;  %3127 = vmatprep.mubr.msk.bf16.mxu0 %vm327_vm4, %v4253_v47 }
 0x216   :  { %821 = vmatpush1.bf16.msra.mxu1 %v4251_v46  ;;  %v390_v52 = vpop.f32.mrf.mxu0  ;;  %3128 = vmatmul.mubr.msk.bf16.vlgmr.msra.gmra.mxu0 %vm327_vm4, %v4257_v49 }
 0x217   :  { %822 = vmatprep.subr.bf16.mxu1 %v4255_v48  ;;  %520 = vmatprep.mubr.bf16.mxu1 %v4893_v1 }
 0x218   :  { %v3122_v55 = vpop.f32.mrf.mxu0  ;;  %3136 = vmatpush3.bf16.msra.mxu0 %v4259_v51 }
 0x219   :  { %3137 = vmatprep.subr.bf16.mxu0 %v4895_v18  ;;  %v4286_v61 = vpack.c.bf16 %v3122_v55, %v3121_v50 }
 0x21a   :  { %823 = vmatpush1.bf16.msra.mxu1 %v4268_v53  ;;  %v393_v57 = vpop.f32.mrf.mxu0 }
 0x21b   :  { %v4281_v59 = vpack.c.bf16 %v393_v57, %v390_v52  ;;  %824 = vmatprep.subr.bf16.mxu1 %v4272_v54  ;;  %4921 = vst [vmem:[#allocation39_spill] sm:$0xff] %v4286_v61 }
 0x21c   :  { %3138 = vmatpush3.bf16.msra.mxu0 %v4275_v56 }
 0x21d   :  { %4920 = vst [vmem:[#allocation38_spill] sm:$0xff] %v4281_v59  ;;  %2831 = vmatmul.mubr.msk.bf16.gmra.mxu1 %vm327_vm4, %v4257_v49  ;;  %3131 = vmatprep.mubr.msk.bf16.mxu0 %vm327_vm4, %v4281_v59 }
 0x21e   :  { %825 = vmatpush1.bf16.msra.mxu1 %v4279_v58  ;;  %3132 = vmatmul.mubr.msk.bf16.gmra.mxu0 %vm327_vm4, %v4286_v61 }
 0x21f   :  { %826 = vmatprep.subr.bf16.mxu1 %v4284_v60  ;;  %530 = vmatprep.mubr.bf16.mxu1 %v4893_v1 }
 0x220   :  { %3139 = vmatprep.subr.bf16.mxu0 %v4895_v18  ;;  %3151 = vmatprep.mubr.msk.bf16.mxu0 %vm4032_vm9, %v4895_v18 }
 0x221   :  { %3140 = vmatpush3.bf16.msra.mxu0 %v4293_v62 }
 0x222   :  { %827 = vmatpush1.bf16.msra.mxu1 %v4298_v63  ;;  %3141 = vmatprep.subr.bf16.mxu0 %v4895_v18 }
 0x223   :  { %828 = vmatprep.subr.bf16.mxu1 %v4302_v0 }
 0x225   :  { %2832 = vmatmul.mubr.msk.bf16.gmra.mxu1 %vm327_vm4, %v4281_v59  ;;  %3142 = vmatpush3.bf16.msra.mxu0 %v4308_v2 }
 0x226   :  { %829 = vmatpush1.bf16.msra.mxu1 %v4311_v3  ;;  %540 = vmatprep.mubr.bf16.mxu1 %v4893_v1 }
 0x227   :  { %830 = vmatprep.subr.bf16.mxu1 %v4315_v4  ;;  %3143 = vmatprep.subr.bf16.mxu0 %v4895_v18 }
 0x229   :  { %3144 = vmatpush3.bf16.msra.mxu0 %v4320_v5 }
 0x22a   :  { %831 = vmatpush1.bf16.msra.mxu1 %v4323_v6  ;;  %3145 = vmatprep.subr.bf16.mxu0 %v4895_v18 }
 0x22b   :  { %832 = vmatprep.subr.bf16.mxu1 %v4327_v7 }
 0x22d   :  { %2833 = vmatmul.mubr.msk.bf16.gmra.mxu1 %vm327_vm4, %v4286_v61  ;;  %3146 = vmatpush3.bf16.msra.mxu0 %v4331_v8 }
 0x22e   :  { %833 = vmatpush1.bf16.msra.mxu1 %v4334_v9  ;;  %852 = vmatprep.mubr.bf16.mxu1 %v4893_v1 }
 0x22f   :  { %834 = vmatprep.subr.bf16.mxu1 %v4338_v10  ;;  %3147 = vmatprep.subr.bf16.mxu0 %v4895_v18 }
 0x231   :  { %3148 = vmatpush3.bf16.msra.mxu0 %v4343_v11 }
 0x232   :  { %835 = vmatpush1.bf16.msra.mxu1 %v4346_v13  ;;  %3149 = vmatprep.subr.bf16.mxu0 %v4895_v18 }
 0x233   :  { %927 = vmatprep.subr.bf16.mxu1 %v4247_v41 }
 0x235   :  { %853 = vmatmul.mubr.bf16.vlgmr.msra.gmra.mxu1 %v4893_v1  ;;  %3150 = vmatpush3.bf16.msra.mxu0 %v4352_v14 }
 0x236   :  { %3155 = vmatprep.subr.bf16.mxu0 %v4895_v18  ;;  %928 = vmatpush1.bf16.msra.mxu1 %v4251_v46 }
 0x237   :  { %929 = vmatprep.subr.bf16.mxu1 %v4255_v48  ;;  %959 = vmatprep.mubr.bf16.mxu1 %v4893_v1 }
 0x238   :  { %3152 = vmatmul.mubr.bf16.vlgmr.msra.gmra.mxu0 %v4893_v1 }
 0x239   :  { %3156 = vmatpush3.bf16.msra.mxu0 %v4259_v51  ;;  %3171 = vmatprep.mubr.msk.bf16.mxu0 %vm4032_vm9, %v4895_v18 }
 0x23a   :  { %3157 = vmatprep.subr.bf16.mxu0 %v4895_v18  ;;  %930 = vmatpush1.bf16.msra.mxu1 %v4268_v53 }
 0x23b   :  { %931 = vmatprep.subr.bf16.mxu1 %v4272_v54 }
 0x23d   :  { %3158 = vmatpush3.bf16.msra.mxu0 %v4275_v56 }
 0x23e   :  { %3159 = vmatprep.subr.bf16.mxu0 %v4895_v18  ;;  %932 = vmatpush1.bf16.msra.mxu1 %v4279_v58 }
 0x23f   :  { %933 = vmatprep.subr.bf16.mxu1 %v4284_v60 }
 0x241   :  { %3160 = vmatpush3.bf16.msra.mxu0 %v4293_v62 }
 0x242   :  { %3161 = vmatprep.subr.bf16.mxu0 %v4895_v18  ;;  %934 = vmatpush1.bf16.msra.mxu1 %v4298_v63 }
 0x243   :  { %935 = vmatprep.subr.bf16.mxu1 %v4302_v0 }
 0x245   :  { %3162 = vmatpush3.bf16.msra.mxu0 %v4308_v2 }
 0x246   :  { %3163 = vmatprep.subr.bf16.mxu0 %v4895_v18  ;;  %936 = vmatpush1.bf16.msra.mxu1 %v4311_v3 }
 0x247   :  { %937 = vmatprep.subr.bf16.mxu1 %v4315_v4 }
 0x249   :  { %3164 = vmatpush3.bf16.msra.mxu0 %v4320_v5 }
 0x24a   :  { %3165 = vmatprep.subr.bf16.mxu0 %v4895_v18  ;;  %938 = vmatpush1.bf16.msra.mxu1 %v4323_v6 }
 0x24b   :  { %939 = vmatprep.subr.bf16.mxu1 %v4327_v7 }
 0x24d   :  { %3166 = vmatpush3.bf16.msra.mxu0 %v4331_v8 }
 0x24e   :  { %3167 = vmatprep.subr.bf16.mxu0 %v4895_v18  ;;  %940 = vmatpush1.bf16.msra.mxu1 %v4334_v9 }
 0x24f   :  { %941 = vmatprep.subr.bf16.mxu1 %v4338_v10 }
 0x251   :  { %3168 = vmatpush3.bf16.msra.mxu0 %v4343_v11 }
 0x252   :  { %3169 = vmatprep.subr.bf16.mxu0 %v4895_v18  ;;  %942 = vmatpush1.bf16.msra.mxu1 %v4346_v13 }
 0x253   :  { %1034 = vmatprep.subr.bf16.mxu1 %v4247_v41 }
 0x255   :  { %3170 = vmatpush3.bf16.msra.mxu0 %v4352_v14 }
 0x256   :  { %3175 = vmatprep.subr.bf16.mxu0 %v4895_v18  ;;  %v672_v18 = vld [vmem:[#allocation12] sm:$0x7] }
 0x2d5   :  { %v512_v21 = vpop.f32.mrf.mxu1 }
 0x2d6   :  { %v3129_v22 = vpop.f32.mrf.mxu0  ;;  %v513_v59 = vadd.f32 %v512_v21, %v422_v25 }
 0x2d7   :  { %v4411_v24 = vadd.f32 %v3129_v22, %v4402_v19  ;;  %v514_v12 = vpop.f32.mrf.mxu1 }
 0x2d8   :  { %v4414_v26 = vpop.f32.mrf.mxu0 }
 0x2d9   :  { %v516_v27 = vpop.f32.mrf.mxu1 }
 0x2da   :  { %v4417_v29 = vadd.f32 %v516_v27, %v422_v25  ;;  %v3130_v30 = vpop.f32.mrf.mxu0 }
 0x2db   :  { %v4420_v31 = vadd.f32 %v3130_v30, %v4402_v19  ;;  %v518_v32 = vpop.f32.mrf.mxu1 }
 0x2dc   :  { %v4422_v33 = vadd.f32 %v518_v32, %v426_v28  ;;  %v588_v34 = vpop.f32.mrf.mxu0 }
 0x2dd   :  { %v4425_v35 = vadd.f32 %v588_v34, %v4402_v19  ;;  %v522_v36 = vpop.f32.mrf.mxu1 }
 0x2de   :  { %v4427_v37 = vadd.f32 %v522_v36, %v422_v25  ;;  %v3133_v38 = vpop.f32.mrf.mxu0 }
 0x2df   :  { %v4430_v39 = vadd.f32 %v3133_v38, %v4402_v19  ;;  %v524_v40 = vpop.f32.mrf.mxu1 }
 0x2e0   :  { %v4432_v42 = vadd.f32 %v524_v40, %v426_v28  ;;  %v601_v43 = vpop.f32.mrf.mxu0 }
 0x2e1   :  { %4924 = vst [vmem:[#allocation42_spill] sm:$0xff] %v4430_v39  ;;  %v4435_v44 = vadd.f32 %v601_v43, %v4402_v19  ;;  %v526_v45 = vpop.f32.mrf.mxu1 }
 0x2e2   :  { %v4437_v50 = vadd.f32 %v526_v45, %v422_v25  ;;  %v3134_v52 = vpop.f32.mrf.mxu0 }
 0x2e3   :  { %v4440_v55 = vadd.f32 %v3134_v52, %v4402_v19  ;;  %v528_v57 = vpop.f32.mrf.mxu1 }
 0x2e4   :  { %v4442_v17 = vadd.f32 %v528_v57, %v426_v28  ;;  %v604_v22 = vpop.f32.mrf.mxu0 }
 0x2e5   :  { %4925 = vst [vmem:[#allocation43_spill] sm:$0xff] %v4440_v55  ;;  %v4445_v27 = vadd.f32 %v604_v22, %v4402_v19  ;;  %v532_v30 = vpop.f32.mrf.mxu1 }
 0x2e6   :  { %v4447_v32 = vadd.f32 %v532_v30, %v422_v25  ;;  %v4462_v30 = vrot.slane %v672_v18, %v4405_v20 }
 0x2e7   :  { %4926 = vst [vmem:[#allocation44_spill] sm:$0xff] %v4445_v27  ;;  %v534_v34 = vpop.f32.mrf.mxu1 }
 0x2e8   :  { %v4449_v36 = vadd.f32 %v534_v34, %v426_v28 }
 0x2e9   :  { %v536_v38 = vpop.f32.mrf.mxu1 }
 0x2ea   :  { %v4451_v40 = vadd.f32 %v536_v38, %v422_v25 }
 0x2eb   :  { %v538_v43 = vpop.f32.mrf.mxu1 }
 0x2ec   :  { %v4453_v45 = vadd.f32 %v538_v43, %v426_v28 }
 0x2ed   :  { %v542_v52 = vpop.f32.mrf.mxu1 }
 0x2ee   :  { %v4455_v1 = vadd.f32 %v542_v52, %v422_v25  ;;  %v4468_v52 = vrot.slane %v672_v18, %v4408_v23  ;;  %v4931_v23 = vsub.s32 2, %v4397_v15 }
 0x2ef   :  { %v544_v57 = vpop.f32.mrf.mxu1 }
 0x2f0   :  { %4927 = vst [vmem:[#allocation45_spill] sm:$0xff] %v4455_v1  ;;  %v4457_v16 = vadd.f32 %v544_v57, %v426_v28  ;;  %v515_v1 = vadd.f32 %v514_v12, %v426_v28 }
 0x2f1   :  { %v546_v22 = vpop.f32.mrf.mxu1 }
 0x2f2   :  { %4928 = vst [vmem:[#allocation46_spill] sm:$0xff] %v4457_v16  ;;  %v4459_v55 = vadd.f32 %v546_v22, %v422_v25 }
 0x2f3   :  { %v548_v34 = vpop.f32.mrf.mxu1 }
 0x2f4   :  { %4929 = vst [vmem:[#allocation47_spill] sm:$0xff] %v4459_v55  ;;  %v4464_v61 = vadd.f32 %v548_v34, %v426_v28 }
 0x2f5   :  { %v854_v38 = vpop.f32.mrf.mxu1 }
 0x2f6   :  { %4930 = vst [vmem:[#allocation48_spill] sm:$0xff] %v4464_v61  ;;  %v855_v43 = vadd.f32 %v854_v38, %v4462_v30 }
 0x2f7   :  { %v856_v49 = vpop.f32.mrf.mxu1 }
 0x2f8   :  { %v901_v47 = vadd.f32 %v855_v43, %v513_v59  ;;  %v895_v57 = vpop.f32.mrf.mxu0  ;;  %v857_v22 = vadd.f32 %v856_v49, %v4468_v52  ;;  %v4473_v59 = vrot.slane %v672_v18, %v4931_v23  ;;  %v4933_v23 = vmov 0  }
 0x2f9   :  { %v858_v39 = vpop.f32.mrf.mxu1 }
 0x2fa   :  { %v2862_v16 = vmul.f32 -1.442695, %v901_v47  ;;  %v3153_v55 = vpop.f32.mrf.mxu0  ;;  %v908_v61 = vadd.f32 %v857_v22, %v515_v1  ;;  %v896_v49 = vadd.f32 %v895_v57, %v4473_v59 }
 0x2fb   :  { %v859_v20 = vpop.f32.mrf.mxu1 }
 0x2fc   :  { %3523 = vpow2.f32 %v2862_v16  ;;  %v898_v34 = vpop.f32.mrf.mxu0  ;;  %v2863_v21 = vmul.f32 -1.442695, %v908_v61  ;;  %v586_v16 = vadd.f32 %v4414_v26, %v4402_v19  ;;  %v4932_v19 = vmov 0.0  }
 0x2fe   :  { %v3154_v27 = vpop.f32.mrf.mxu0  ;;  %3525 = vpow2.f32 %v2863_v21 }
 0x309   :  { %v3524_v25 = vpop.eup %3523 }
 0x30a   :  { %v905_v38 = vadd.f32 1.0, %v3524_v25 }
 0x30b   :  { %v3526_v39 = vpop.eup %3525 }
 0x30c   :  { %3527 = vrcp.f32 %v905_v38  ;;  %v912_v47 = vadd.f32 1.0, %v3526_v39 }
 0x30e   :  { %3529 = vrcp.f32 %v912_v47 }
 0x319   :  { %v3528_v55 = vpop.eup %3527 }
 0x31a   :  { %v915_v1 = vmul.f32 %v3528_v55, %v896_v49 }
 0x31b   :  { %v3530_v61 = vpop.eup %3529 }
 0x31c   :  { %v916_v20 = vadd.f32 %v915_v1, %v586_v16  ;;  %v918_v12 = vsub.f32 1.0, %v3530_v61  ;;  %v920_v43 = vmul.f32 0.0, %v3530_v61 }
 0x31e   :  { %3531 = vtanh.f32 %v916_v20 }
 0x32b   :  { %v3532_v28 = vpop.eup %3531 }
 0x32c   :  { %v919_v27 = vmul.f32 %v3532_v28, %v918_v12 }
 0x32e   :  { %v4478_v15 = vadd.f32 %v920_v43, %v919_v27 }
 0x330   :  { %v926_v18 = vpack.c.bf16 %v4478_v15, %v4478_v15 }
 0x332   :  { %960 = vmatmul.mubr.bf16.vlgmr.msra.gmra.mxu1 %v926_v18  ;;  %3172 = vmatmul.mubr.bf16.vlgmr.msra.gmra.mxu0 %v926_v18 }
 0x333   :  { %1035 = vmatpush1.bf16.msra.mxu1 %v4251_v46  ;;  %3176 = vmatpush3.bf16.msra.mxu0 %v4259_v51 }
 0x334   :  { %1036 = vmatprep.subr.bf16.mxu1 %v4255_v48  ;;  %3177 = vmatprep.subr.bf16.mxu0 %v4932_v19 }
 0x335   :  { %1066 = vmatprep.mubr.bf16.mxu1 %v4933_v23  ;;  %3191 = vmatprep.mubr.msk.bf16.mxu0 %vm4032_vm9, %v4932_v19 }
 0x337   :  { %1037 = vmatpush1.bf16.msra.mxu1 %v4268_v53  ;;  %3178 = vmatpush3.bf16.msra.mxu0 %v4275_v56 }
 0x338   :  { %1038 = vmatprep.subr.bf16.mxu1 %v4272_v54  ;;  %3179 = vmatprep.subr.bf16.mxu0 %v4932_v19 }
 0x33b   :  { %1039 = vmatpush1.bf16.msra.mxu1 %v4279_v58  ;;  %3180 = vmatpush3.bf16.msra.mxu0 %v4293_v62 }
 0x33c   :  { %1040 = vmatprep.subr.bf16.mxu1 %v4284_v60  ;;  %3181 = vmatprep.subr.bf16.mxu0 %v4932_v19 }
 0x33f   :  { %1041 = vmatpush1.bf16.msra.mxu1 %v4298_v63  ;;  %3182 = vmatpush3.bf16.msra.mxu0 %v4308_v2 }
 0x340   :  { %1042 = vmatprep.subr.bf16.mxu1 %v4302_v0  ;;  %3183 = vmatprep.subr.bf16.mxu0 %v4932_v19 }
 0x343   :  { %1043 = vmatpush1.bf16.msra.mxu1 %v4311_v3  ;;  %3184 = vmatpush3.bf16.msra.mxu0 %v4320_v5 }
 0x344   :  { %1044 = vmatprep.subr.bf16.mxu1 %v4315_v4  ;;  %3185 = vmatprep.subr.bf16.mxu0 %v4932_v19 }
 0x347   :  { %1045 = vmatpush1.bf16.msra.mxu1 %v4323_v6  ;;  %3186 = vmatpush3.bf16.msra.mxu0 %v4331_v8 }
 0x348   :  { %1046 = vmatprep.subr.bf16.mxu1 %v4327_v7  ;;  %3187 = vmatprep.subr.bf16.mxu0 %v4932_v19 }
 0x34b   :  { %1047 = vmatpush1.bf16.msra.mxu1 %v4334_v9  ;;  %3188 = vmatpush3.bf16.msra.mxu0 %v4343_v11 }
 0x34c   :  { %1048 = vmatprep.subr.bf16.mxu1 %v4338_v10  ;;  %3189 = vmatprep.subr.bf16.mxu0 %v4932_v19 }
 0x34f   :  { %1049 = vmatpush1.bf16.msra.mxu1 %v4346_v13  ;;  %3190 = vmatpush3.bf16.msra.mxu0 %v4352_v14 }
 0x350   :  { %1141 = vmatprep.subr.bf16.mxu1 %v4247_v41  ;;  %3195 = vmatprep.subr.bf16.mxu0 %v4932_v19 }
 0x3f2   :  { %v961_v26 = vpop.f32.mrf.mxu1  ;;  %v1002_v57 = vpop.f32.mrf.mxu0 }
 0x3f3   :  { %v962_v22 = vadd.f32 %v961_v26, %v4462_v30  ;;  %v1003_v43 = vadd.f32 %v1002_v57, %v4473_v59 }
 0x3f4   :  { %v963_v34 = vpop.f32.mrf.mxu1  ;;  %v3173_v21 = vpop.f32.mrf.mxu0 }
 0x3f5   :  { %v1008_v25 = vadd.f32 %v962_v22, %v4417_v29  ;;  %v964_v49 = vadd.f32 %v963_v34, %v4468_v52 }
 0x3f6   :  { %v965_v38 = vpop.f32.mrf.mxu1  ;;  %v1005_v39 = vpop.f32.mrf.mxu0 }
 0x3f7   :  { %v2864_v47 = vmul.f32 -1.442695, %v1008_v25  ;;  %v1015_v1 = vadd.f32 %v964_v49, %v4422_v33 }
 0x3f8   :  { %v966_v55 = vpop.f32.mrf.mxu1  ;;  %v3174_v16 = vpop.f32.mrf.mxu0 }
 0x3f9   :  { %3533 = vpow2.f32 %v2864_v47  ;;  %v2865_v20 = vmul.f32 -1.442695, %v1015_v1 }
 0x3fb   :  { %3535 = vpow2.f32 %v2865_v20 }
 0x406   :  { %v3534_v61 = vpop.eup %3533 }
 0x407   :  { %v1012_v12 = vadd.f32 1.0, %v3534_v61 }
 0x408   :  { %v3536_v28 = vpop.eup %3535 }
 0x409   :  { %3537 = vrcp.f32 %v1012_v12  ;;  %v1019_v27 = vadd.f32 1.0, %v3536_v28 }
 0x40b   :  { %3539 = vrcp.f32 %v1019_v27 }
 0x416   :  { %v3538_v29 = vpop.eup %3537 }
 0x417   :  { %v1022_v18 = vmul.f32 %v3538_v29, %v1003_v43 }
 0x418   :  { %v3540_v22 = vpop.eup %3539 }
 0x419   :  { %v1023_v26 = vadd.f32 %v1022_v18, %v4425_v35  ;;  %v1025_v34 = vsub.f32 1.0, %v3540_v22  ;;  %v1027_v33 = vmul.f32 %v3540_v22, %v4478_v15 }
 0x41b   :  { %3541 = vtanh.f32 %v1023_v26 }
 0x428   :  { %v3542_v21 = vpop.eup %3541 }
 0x429   :  { %v1026_v25 = vmul.f32 %v3542_v21, %v1025_v34 }
 0x42b   :  { %v4524_v38 = vadd.f32 %v1027_v33, %v1026_v25 }
 0x42d   :  { %v1033_v39 = vpack.c.bf16 %v4524_v38, %v4524_v38 }
 0x42f   :  { %1067 = vmatmul.mubr.bf16.vlgmr.msra.gmra.mxu1 %v1033_v39  ;;  %3192 = vmatmul.mubr.bf16.vlgmr.msra.gmra.mxu0 %v1033_v39 }
 0x430   :  { %1142 = vmatpush1.bf16.msra.mxu1 %v4251_v46  ;;  %3196 = vmatpush3.bf16.msra.mxu0 %v4259_v51 }
 0x431   :  { %1143 = vmatprep.subr.bf16.mxu1 %v4255_v48  ;;  %3197 = vmatprep.subr.bf16.mxu0 %v4932_v19 }
 0x432   :  { %1173 = vmatprep.mubr.bf16.mxu1 %v4933_v23  ;;  %3211 = vmatprep.mubr.msk.bf16.mxu0 %vm4032_vm9, %v4932_v19 }
 0x434   :  { %1144 = vmatpush1.bf16.msra.mxu1 %v4268_v53  ;;  %3198 = vmatpush3.bf16.msra.mxu0 %v4275_v56 }
 0x435   :  { %1145 = vmatprep.subr.bf16.mxu1 %v4272_v54  ;;  %3199 = vmatprep.subr.bf16.mxu0 %v4932_v19 }
 0x438   :  { %1146 = vmatpush1.bf16.msra.mxu1 %v4279_v58  ;;  %3200 = vmatpush3.bf16.msra.mxu0 %v4293_v62 }
 0x439   :  { %1147 = vmatprep.subr.bf16.mxu1 %v4284_v60  ;;  %3201 = vmatprep.subr.bf16.mxu0 %v4932_v19 }
 0x43c   :  { %1148 = vmatpush1.bf16.msra.mxu1 %v4298_v63  ;;  %3202 = vmatpush3.bf16.msra.mxu0 %v4308_v2 }
 0x43d   :  { %1149 = vmatprep.subr.bf16.mxu1 %v4302_v0  ;;  %3203 = vmatprep.subr.bf16.mxu0 %v4932_v19 }
 0x440   :  { %1150 = vmatpush1.bf16.msra.mxu1 %v4311_v3  ;;  %3204 = vmatpush3.bf16.msra.mxu0 %v4320_v5 }
 0x441   :  { %1151 = vmatprep.subr.bf16.mxu1 %v4315_v4  ;;  %3205 = vmatprep.subr.bf16.mxu0 %v4932_v19 }
 0x444   :  { %1152 = vmatpush1.bf16.msra.mxu1 %v4323_v6  ;;  %3206 = vmatpush3.bf16.msra.mxu0 %v4331_v8 }
 0x445   :  { %1153 = vmatprep.subr.bf16.mxu1 %v4327_v7  ;;  %3207 = vmatprep.subr.bf16.mxu0 %v4932_v19 }
 0x448   :  { %1154 = vmatpush1.bf16.msra.mxu1 %v4334_v9  ;;  %3208 = vmatpush3.bf16.msra.mxu0 %v4343_v11 }
 0x449   :  { %1155 = vmatprep.subr.bf16.mxu1 %v4338_v10  ;;  %3209 = vmatprep.subr.bf16.mxu0 %v4932_v19 }
 0x44c   :  { %1156 = vmatpush1.bf16.msra.mxu1 %v4346_v13  ;;  %3210 = vmatpush3.bf16.msra.mxu0 %v4352_v14 }
 0x44d   :  { %1248 = vmatprep.subr.bf16.mxu1 %v4247_v41  ;;  %3215 = vmatprep.subr.bf16.mxu0 %v4932_v19 }
 0x4ef   :  { %v1068_v35 = vpop.f32.mrf.mxu1  ;;  %v1109_v57 = vpop.f32.mrf.mxu0 }
 0x4f0   :  { %v1069_v47 = vadd.f32 %v1068_v35, %v4462_v30  ;;  %v1110_v21 = vadd.f32 %v1109_v57, %v4473_v59 }
 0x4f1   :  { %v1070_v49 = vpop.f32.mrf.mxu1  ;;  %v3193_v55 = vpop.f32.mrf.mxu0 }
 0x4f2   :  { %v1115_v16 = vadd.f32 %v1069_v47, %v4427_v37  ;;  %v1071_v12 = vadd.f32 %v1070_v49, %v4468_v52 }
 0x4f3   :  { %v1072_v1 = vpop.f32.mrf.mxu1  ;;  %v1112_v20 = vpop.f32.mrf.mxu0 }
 0x4f4   :  { %v2866_v61 = vmul.f32 -1.442695, %v1115_v16  ;;  %v1122_v43 = vadd.f32 %v1071_v12, %v4432_v42 }
 0x4f5   :  { %v1073_v28 = vpop.f32.mrf.mxu1  ;;  %v3194_v27 = vpop.f32.mrf.mxu0 }
 0x4f6   :  { %3543 = vpow2.f32 %v2866_v61  ;;  %v2867_v29 = vmul.f32 -1.442695, %v1122_v43 }
 0x4f8   :  { %3545 = vpow2.f32 %v2867_v29 }
 0x503   :  { %v3544_v18 = vpop.eup %3543 }
 0x504   :  { %v1119_v26 = vadd.f32 1.0, %v3544_v18 }
 0x505   :  { %v3546_v22 = vpop.eup %3545 }
 0x506   :  { %3547 = vrcp.f32 %v1119_v26  ;;  %v1126_v34 = vadd.f32 1.0, %v3546_v22 }
 0x508   :  { %3549 = vrcp.f32 %v1126_v34 }
 0x513   :  { %v3548_v37 = vpop.eup %3547 }
 0x514   :  { %v1129_v25 = vmul.f32 %v3548_v37, %v1110_v21 }
 0x515   :  { %v3550_v39 = vpop.eup %3549 }
 0x516   :  { %v1130_v33 = vadd.f32 %v1129_v25, %v4411_v24  ;;  %v1132_v35 = vsub.f32 1.0, %v3550_v39  ;;  %v1134_v42 = vmul.f32 %v3550_v39, %v4524_v38 }
 0x518   :  { %3551 = vtanh.f32 %v1130_v33 }
 0x525   :  { %v3552_v47 = vpop.eup %3551 }
 0x526   :  { %v1133_v49 = vmul.f32 %v3552_v47, %v1132_v35 }
 0x528   :  { %v4570_v55 = vadd.f32 %v1134_v42, %v1133_v49 }
 0x52a   :  { %v1140_v16 = vpack.c.bf16 %v4570_v55, %v4570_v55 }
 0x52c   :  { %1174 = vmatmul.mubr.bf16.vlgmr.msra.gmra.mxu1 %v1140_v16  ;;  %3212 = vmatmul.mubr.bf16.vlgmr.msra.gmra.mxu0 %v1140_v16 }
 0x52d   :  { %1249 = vmatpush1.bf16.msra.mxu1 %v4251_v46  ;;  %3216 = vmatpush3.bf16.msra.mxu0 %v4259_v51 }
 0x52e   :  { %1250 = vmatprep.subr.bf16.mxu1 %v4255_v48  ;;  %3217 = vmatprep.subr.bf16.mxu0 %v4932_v19 }
 0x52f   :  { %1280 = vmatprep.mubr.bf16.mxu1 %v4933_v23  ;;  %3231 = vmatprep.mubr.msk.bf16.mxu0 %vm4032_vm9, %v4932_v19 }
 0x531   :  { %1251 = vmatpush1.bf16.msra.mxu1 %v4268_v53  ;;  %3218 = vmatpush3.bf16.msra.mxu0 %v4275_v56 }
 0x532   :  { %1252 = vmatprep.subr.bf16.mxu1 %v4272_v54  ;;  %3219 = vmatprep.subr.bf16.mxu0 %v4932_v19 }
 0x535   :  { %1253 = vmatpush1.bf16.msra.mxu1 %v4279_v58  ;;  %3220 = vmatpush3.bf16.msra.mxu0 %v4293_v62 }
 0x536   :  { %1254 = vmatprep.subr.bf16.mxu1 %v4284_v60  ;;  %3221 = vmatprep.subr.bf16.mxu0 %v4932_v19 }
 0x539   :  { %1255 = vmatpush1.bf16.msra.mxu1 %v4298_v63  ;;  %3222 = vmatpush3.bf16.msra.mxu0 %v4308_v2 }
 0x53a   :  { %1256 = vmatprep.subr.bf16.mxu1 %v4302_v0  ;;  %3223 = vmatprep.subr.bf16.mxu0 %v4932_v19 }
 0x53d   :  { %1257 = vmatpush1.bf16.msra.mxu1 %v4311_v3  ;;  %3224 = vmatpush3.bf16.msra.mxu0 %v4320_v5 }
 0x53e   :  { %1258 = vmatprep.subr.bf16.mxu1 %v4315_v4  ;;  %3225 = vmatprep.subr.bf16.mxu0 %v4932_v19 }
 0x541   :  { %1259 = vmatpush1.bf16.msra.mxu1 %v4323_v6  ;;  %3226 = vmatpush3.bf16.msra.mxu0 %v4331_v8 }
 0x542   :  { %1260 = vmatprep.subr.bf16.mxu1 %v4327_v7  ;;  %3227 = vmatprep.subr.bf16.mxu0 %v4932_v19 }
 0x545   :  { %1261 = vmatpush1.bf16.msra.mxu1 %v4334_v9  ;;  %3228 = vmatpush3.bf16.msra.mxu0 %v4343_v11 }
 0x546   :  { %1262 = vmatprep.subr.bf16.mxu1 %v4338_v10  ;;  %3229 = vmatprep.subr.bf16.mxu0 %v4932_v19 }
 0x549   :  { %1263 = vmatpush1.bf16.msra.mxu1 %v4346_v13  ;;  %3230 = vmatpush3.bf16.msra.mxu0 %v4352_v14 }
 0x54a   :  { %1355 = vmatprep.subr.bf16.mxu1 %v4247_v41  ;;  %3235 = vmatprep.subr.bf16.mxu0 %v4932_v19 }
 0x5ec   :  { %v1175_v24 = vpop.f32.mrf.mxu1  ;;  %v1216_v57 = vpop.f32.mrf.mxu0 }
 0x5ed   :  { %v1176_v1 = vadd.f32 %v1175_v24, %v4462_v30  ;;  %v1217_v39 = vadd.f32 %v1216_v57, %v4473_v59 }
 0x5ee   :  { %v1177_v20 = vpop.f32.mrf.mxu1  ;;  %v3213_v61 = vpop.f32.mrf.mxu0 }
 0x5ef   :  { %v1222_v12 = vadd.f32 %v1176_v1, %v4437_v50  ;;  %v1178_v29 = vadd.f32 %v1177_v20, %v4468_v52 }
 0x5f0   :  { %v1179_v28 = vpop.f32.mrf.mxu1  ;;  %v1219_v27 = vpop.f32.mrf.mxu0 }
 0x5f1   :  { %v2868_v43 = vmul.f32 -1.442695, %v1222_v12  ;;  %v1229_v22 = vadd.f32 %v1178_v29, %v4442_v17 }
 0x5f2   :  { %v1180_v18 = vpop.f32.mrf.mxu1  ;;  %v3214_v26 = vpop.f32.mrf.mxu0 }
 0x5f3   :  { %3553 = vpow2.f32 %v2868_v43  ;;  %v2869_v34 = vmul.f32 -1.442695, %v1229_v22 }
 0x5f5   :  { %3555 = vpow2.f32 %v2869_v34 }
 0x600   :  { %v3554_v21 = vpop.eup %3553 }
 0x601   :  { %v1226_v37 = vadd.f32 1.0, %v3554_v21 }
 0x602   :  { %v3556_v25 = vpop.eup %3555 }
 0x603   :  { %3557 = vrcp.f32 %v1226_v37  ;;  %v1233_v33 = vadd.f32 1.0, %v3556_v25 }
 0x605   :  { %3559 = vrcp.f32 %v1233_v33 }
 0x610   :  { %v3558_v50 = vpop.eup %3557 }
 0x611   :  { %v1236_v35 = vmul.f32 %v3558_v50, %v1217_v39 }
 0x612   :  { %v3560_v49 = vpop.eup %3559 }
 0x613   :  { %v1237_v47 = vadd.f32 %v1236_v35, %v4420_v31  ;;  %v1239_v42 = vsub.f32 1.0, %v3560_v49  ;;  %v1241_v17 = vmul.f32 %v3560_v49, %v4570_v55 }
 0x615   :  { %3561 = vtanh.f32 %v1237_v47 }
 0x622   :  { %v3562_v16 = vpop.eup %3561 }
 0x623   :  { %v1240_v24 = vmul.f32 %v3562_v16, %v1239_v42 }
 0x625   :  { %v4616_v1 = vadd.f32 %v1241_v17, %v1240_v24 }
 0x627   :  { %v1247_v20 = vpack.c.bf16 %v4616_v1, %v4616_v1 }
 0x629   :  { %1281 = vmatmul.mubr.bf16.vlgmr.msra.gmra.mxu1 %v1247_v20  ;;  %3232 = vmatmul.mubr.bf16.vlgmr.msra.gmra.mxu0 %v1247_v20 }
 0x62a   :  { %1356 = vmatpush1.bf16.msra.mxu1 %v4251_v46  ;;  %3236 = vmatpush3.bf16.msra.mxu0 %v4259_v51 }
 0x62b   :  { %1357 = vmatprep.subr.bf16.mxu1 %v4255_v48  ;;  %3237 = vmatprep.subr.bf16.mxu0 %v4932_v19 }
 0x62c   :  { %1387 = vmatprep.mubr.bf16.mxu1 %v4933_v23  ;;  %3251 = vmatprep.mubr.msk.bf16.mxu0 %vm4032_vm9, %v4932_v19 }
 0x62e   :  { %1358 = vmatpush1.bf16.msra.mxu1 %v4268_v53  ;;  %3238 = vmatpush3.bf16.msra.mxu0 %v4275_v56 }
 0x62f   :  { %1359 = vmatprep.subr.bf16.mxu1 %v4272_v54  ;;  %3239 = vmatprep.subr.bf16.mxu0 %v4932_v19 }
 0x632   :  { %1360 = vmatpush1.bf16.msra.mxu1 %v4279_v58  ;;  %3240 = vmatpush3.bf16.msra.mxu0 %v4293_v62 }
 0x633   :  { %1361 = vmatprep.subr.bf16.mxu1 %v4284_v60  ;;  %3241 = vmatprep.subr.bf16.mxu0 %v4932_v19 }
 0x636   :  { %1362 = vmatpush1.bf16.msra.mxu1 %v4298_v63  ;;  %3242 = vmatpush3.bf16.msra.mxu0 %v4308_v2 }
 0x637   :  { %1363 = vmatprep.subr.bf16.mxu1 %v4302_v0  ;;  %3243 = vmatprep.subr.bf16.mxu0 %v4932_v19 }
 0x63a   :  { %1364 = vmatpush1.bf16.msra.mxu1 %v4311_v3  ;;  %3244 = vmatpush3.bf16.msra.mxu0 %v4320_v5 }
 0x63b   :  { %1365 = vmatprep.subr.bf16.mxu1 %v4315_v4  ;;  %3245 = vmatprep.subr.bf16.mxu0 %v4932_v19 }
 0x63e   :  { %1366 = vmatpush1.bf16.msra.mxu1 %v4323_v6  ;;  %3246 = vmatpush3.bf16.msra.mxu0 %v4331_v8 }
 0x63f   :  { %1367 = vmatprep.subr.bf16.mxu1 %v4327_v7  ;;  %3247 = vmatprep.subr.bf16.mxu0 %v4932_v19 }
 0x642   :  { %1368 = vmatpush1.bf16.msra.mxu1 %v4334_v9  ;;  %3248 = vmatpush3.bf16.msra.mxu0 %v4343_v11 }
 0x643   :  { %1369 = vmatprep.subr.bf16.mxu1 %v4338_v10  ;;  %3249 = vmatprep.subr.bf16.mxu0 %v4932_v19 }
 0x646   :  { %1370 = vmatpush1.bf16.msra.mxu1 %v4346_v13  ;;  %3250 = vmatpush3.bf16.msra.mxu0 %v4352_v14 }
 0x647   :  { %1462 = vmatprep.subr.bf16.mxu1 %v4247_v41  ;;  %3255 = vmatprep.subr.bf16.mxu0 %v4932_v19 }
 0x6e9   :  { %v1282_v31 = vpop.f32.mrf.mxu1  ;;  %v1323_v57 = vpop.f32.mrf.mxu0 }
 0x6ea   :  { %v1283_v61 = vadd.f32 %v1282_v31, %v4462_v30  ;;  %v1324_v50 = vadd.f32 %v1323_v57, %v4473_v59 }
 0x6eb   :  { %v1284_v12 = vpop.f32.mrf.mxu1  ;;  %v3233_v28 = vpop.f32.mrf.mxu0 }
 0x6ec   :  { %v1329_v27 = vadd.f32 %v1283_v61, %v4447_v32  ;;  %v1285_v26 = vadd.f32 %v1284_v12, %v4468_v52 }
 0x6ed   :  { %v1286_v43 = vpop.f32.mrf.mxu1  ;;  %v1326_v29 = vpop.f32.mrf.mxu0 }
 0x6ee   :  { %v2870_v18 = vmul.f32 -1.442695, %v1329_v27  ;;  %v1336_v41 = vadd.f32 %v1285_v26, %v4449_v36  ;;  %v3670_v27 = vld [vmem:[#allocation9 + $0xa8] ss:$12 sps:$4 sm:$0xff]   ;;  %v3671_v43 = vld [vmem:[#allocation9 + $0xb0] ss:$12 sps:$4 sm:$0xff]  }
 0x6ef   :  { %v1287_v22 = vpop.f32.mrf.mxu1  ;;  %v3234_v34 = vpop.f32.mrf.mxu0  ;;  %v3672_v29 = vld [vmem:[#allocation9 + $0x94] ss:$12 sps:$4 sm:$0xff]   ;;  %v3674_v26 = vld [vmem:[#allocation9 + $0x98] ss:$12 sps:$4 sm:$0xff]  }
 0x6f0   :  { %3563 = vpow2.f32 %v2870_v18  ;;  %v2871_v21 = vmul.f32 -1.442695, %v1336_v41  ;;  %v3673_v18 = vld [vmem:[#allocation9 + $0x90] ss:$12 sps:$4 sm:$0xff]   ;;  %v3676_v34 = vld [vmem:[#allocation9 + $0x78] ss:$12 sps:$4 sm:$0xff]  }
 0x6f1   :  { %v3675_v22 = vld [vmem:[#allocation9 + $0x7c] ss:$12 sps:$4 sm:$0xff]   ;;  %v3677_v41 = vld [vmem:[#allocation9 + $0x80] ss:$12 sps:$4 sm:$0xff]  }
 0x6f2   :  { %3565 = vpow2.f32 %v2871_v21  ;;  %v3678_v21 = vld [vmem:[#allocation9 + $0x64] ss:$12 sps:$4 sm:$0xff]  }
 0x6fd   :  { %v3564_v37 = vpop.eup %3563 }
 0x6fe   :  { %v1333_v25 = vadd.f32 1.0, %v3564_v37  ;;  %v3679_v37 = vld [vmem:[#allocation9 + $0x60] ss:$12 sps:$4 sm:$0xff]  }
 0x6ff   :  { %v3566_v33 = vpop.eup %3565 }
 0x700   :  { %3567 = vrcp.f32 %v1333_v25  ;;  %v1340_v39 = vadd.f32 1.0, %v3566_v33  ;;  %v3680_v25 = vld [vmem:[#allocation9 + $0x68] ss:$12 sps:$4 sm:$0xff]   ;;  %v3681_v33 = vld [vmem:[#allocation9 + $0x4c] ss:$12 sps:$4 sm:$0xff]  }
 0x702   :  { %3569 = vrcp.f32 %v1340_v39  ;;  %v3682_v39 = vld [vmem:[#allocation9 + $0x48] ss:$12 sps:$4 sm:$0xff]  }
 0x70d   :  { %v3568_v32 = vpop.eup %3567 }
 0x70e   :  { %v1343_v35 = vmul.f32 %v3568_v32, %v1324_v50  ;;  %v3683_v50 = vld [vmem:[#allocation9 + $0x50] ss:$12 sps:$4 sm:$0xff]   ;;  %v3684_v32 = vld [vmem:[#allocation9 + $0x34] ss:$12 sps:$4 sm:$0xff]  }
 0x70f   :  { %v3570_v49 = vpop.eup %3569 }
 0x710   :  { %v1344_v47 = vadd.f32 %v1343_v35, %v4435_v44  ;;  %v1346_v42 = vsub.f32 1.0, %v3570_v49  ;;  %v1348_v36 = vmul.f32 %v3570_v49, %v4616_v1  ;;  %v3685_v35 = vld [vmem:[#allocation9 + $0x30] ss:$12 sps:$4 sm:$0xff]  }
 0x711   :  { %v3687_v49 = vld [vmem:[#allocation9 + $0x1c] ss:$12 sps:$4 sm:$0xff]  }
 0x712   :  { %3571 = vtanh.f32 %v1344_v47  ;;  %v3686_v47 = vld [vmem:[#allocation9 + $0x38] ss:$12 sps:$4 sm:$0xff]  }
 0x71f   :  { %v3572_v16 = vpop.eup %3571 }
 0x720   :  { %v1347_v24 = vmul.f32 %v3572_v16, %v1346_v42  ;;  %v3688_v42 = vld [vmem:[#allocation9 + $0x18] ss:$12 sps:$4 sm:$0xff]   ;;  %v3689_v16 = vld [vmem:[#allocation9 + $0x20] ss:$12 sps:$4 sm:$0xff]  }
 0x722   :  { %v4662_v17 = vadd.f32 %v1348_v36, %v1347_v24  ;;  %v3690_v24 = vld [vmem:[#allocation9 + $0x4] ss:$12 sps:$4 sm:$0xff]   ;;  %v3691_v36 = vld [vmem:[#allocation9] ss:$12 sps:$4 sm:$0xff]  }
 0x724   :  { %v1354_v20 = vpack.c.bf16 %v4662_v17, %v4662_v17 }
 0x726   :  { %1388 = vmatmul.mubr.bf16.vlgmr.msra.gmra.mxu1 %v1354_v20  ;;  %3252 = vmatmul.mubr.bf16.vlgmr.msra.gmra.mxu0 %v1354_v20  ;;  %v3692_v20 = vld [vmem:[#allocation9 + $0x8] ss:$12 sps:$4 sm:$0xff]  }
 0x727   :  { %1463 = vmatpush1.bf16.msra.mxu1 %v4251_v46  ;;  %3256 = vmatpush3.bf16.msra.mxu0 %v4259_v51  ;;  %v3669_v46 = vld [vmem:[#allocation9 + $0xac] ss:$12 sps:$4 sm:$0xff]  }
 0x728   :  { %1464 = vmatprep.subr.bf16.mxu1 %v4255_v48  ;;  %3257 = vmatprep.subr.bf16.mxu0 %v4932_v19 }
 0x729   :  { %1494 = vmatprep.mubr.bf16.mxu1 %v4933_v23  ;;  %3271 = vmatprep.mubr.msk.bf16.mxu0 %vm4032_vm9, %v4932_v19 }
 0x72b   :  { %1465 = vmatpush1.bf16.msra.mxu1 %v4268_v53  ;;  %3258 = vmatpush3.bf16.msra.mxu0 %v4275_v56 }
 0x72c   :  { %1466 = vmatprep.subr.bf16.mxu1 %v4272_v54  ;;  %3259 = vmatprep.subr.bf16.mxu0 %v4932_v19 }
 0x72f   :  { %1467 = vmatpush1.bf16.msra.mxu1 %v4279_v58  ;;  %3260 = vmatpush3.bf16.msra.mxu0 %v4293_v62 }
 0x730   :  { %1468 = vmatprep.subr.bf16.mxu1 %v4284_v60  ;;  %3261 = vmatprep.subr.bf16.mxu0 %v4932_v19 }
 0x733   :  { %1469 = vmatpush1.bf16.msra.mxu1 %v4298_v63  ;;  %3262 = vmatpush3.bf16.msra.mxu0 %v4308_v2 }
 0x734   :  { %1470 = vmatprep.subr.bf16.mxu1 %v4302_v0  ;;  %3263 = vmatprep.subr.bf16.mxu0 %v4932_v19 }
 0x737   :  { %1471 = vmatpush1.bf16.msra.mxu1 %v4311_v3  ;;  %3264 = vmatpush3.bf16.msra.mxu0 %v4320_v5 }
 0x738   :  { %1472 = vmatprep.subr.bf16.mxu1 %v4315_v4  ;;  %3265 = vmatprep.subr.bf16.mxu0 %v4932_v19 }
 0x73b   :  { %1473 = vmatpush1.bf16.msra.mxu1 %v4323_v6  ;;  %3266 = vmatpush3.bf16.msra.mxu0 %v4331_v8 }
 0x73c   :  { %1474 = vmatprep.subr.bf16.mxu1 %v4327_v7  ;;  %3267 = vmatprep.subr.bf16.mxu0 %v4932_v19 }
 0x73f   :  { %1475 = vmatpush1.bf16.msra.mxu1 %v4334_v9  ;;  %3268 = vmatpush3.bf16.msra.mxu0 %v4343_v11 }
 0x740   :  { %1476 = vmatprep.subr.bf16.mxu1 %v4338_v10  ;;  %3269 = vmatprep.subr.bf16.mxu0 %v4932_v19 }
 0x743   :  { %1477 = vmatpush1.bf16.msra.mxu1 %v4346_v13  ;;  %3270 = vmatpush3.bf16.msra.mxu0 %v4352_v14  ;;  %v4934_v14 = vld [vmem:[#allocation44_spill] sm:$0xff] }
 0x744   :  { %1569 = vmatprep.subr.bf16.mxu1 %v3669_v46  ;;  %3275 = vmatprep.subr.bf16.mxu0 %v4932_v19  ;;  %v3455_v46 = vld [vmem:[%s4878_s7 + $0x38] sm:$0xff]  }
 0x7e6   :  { %v1389_v48 = vpop.f32.mrf.mxu1  ;;  %v1430_v51 = vpop.f32.mrf.mxu0 }
 0x7e7   :  { %v1390_v53 = vadd.f32 %v1389_v48, %v4462_v30  ;;  %v1431_v10 = vadd.f32 %v1430_v51, %v4473_v59  ;;  %v3456_v48 = vld [vmem:[#allocation13 + $0x8] sm:$0xff]  }
 0x7e8   :  { %v1391_v54 = vpop.f32.mrf.mxu1  ;;  %v3253_v56 = vpop.f32.mrf.mxu0 }
 0x7e9   :  { %v1436_v58 = vadd.f32 %v1390_v53, %v4451_v40  ;;  %v1392_v0 = vadd.f32 %v1391_v54, %v4468_v52 }
 0x7ea   :  { %v1393_v60 = vpop.f32.mrf.mxu1  ;;  %v1433_v62 = vpop.f32.mrf.mxu0 }
 0x7eb   :  { %v2872_v63 = vmul.f32 -1.442695, %v1436_v58  ;;  %v1443_v4 = vadd.f32 %v1392_v0, %v4453_v45  ;;  %v4935_v60 = vld [vmem:[#allocation45_spill] sm:$0xff] }
 0x7ec   :  { %v1394_v2 = vpop.f32.mrf.mxu1  ;;  %v3254_v3 = vpop.f32.mrf.mxu0 }
 0x7ed   :  { %3573 = vpow2.f32 %v2872_v63  ;;  %v2873_v5 = vmul.f32 -1.442695, %v1443_v4 }
 0x7ef   :  { %3575 = vpow2.f32 %v2873_v5 }
 0x7fa   :  { %v3574_v6 = vpop.eup %3573 }
 0x7fb   :  { %v1440_v7 = vadd.f32 1.0, %v3574_v6  ;;  %v4936_v6 = vld [vmem:[#allocation46_spill] sm:$0xff] }
 0x7fc   :  { %v3576_v8 = vpop.eup %3575 }
 0x7fd   :  { %3577 = vrcp.f32 %v1440_v7  ;;  %v1447_v9 = vadd.f32 1.0, %v3576_v8 }
 0x7ff   :  { %3579 = vrcp.f32 %v1447_v9 }
 0x80a   :  { %v3578_v11 = vpop.eup %3577 }
 0x80b   :  { %v1450_v13 = vmul.f32 %v3578_v11, %v1431_v10 }
 0x80c   :  { %v3580_v40 = vpop.eup %3579 }
 0x80d   :  { %v1451_v44 = vadd.f32 %v1450_v13, %v4934_v14  ;;  %v1453_v31 = vsub.f32 1.0, %v3580_v40  ;;  %v1455_v45 = vmul.f32 %v3580_v40, %v4662_v17 }
 0x80f   :  { %3581 = vtanh.f32 %v1451_v44 }
 0x81c   :  { %v3582_v57 = vpop.eup %3581 }
 0x81d   :  { %v1454_v61 = vmul.f32 %v3582_v57, %v1453_v31  ;;  %v4937_v31 = vld [vmem:[#allocation42_spill] sm:$0xff] }
 0x81f   :  { %v4707_v12 = vadd.f32 %v1455_v45, %v1454_v61 }
 0x821   :  { %v1461_v28 = vpack.c.bf16 %v4707_v12, %v4707_v12 }
 0x823   :  { %1495 = vmatmul.mubr.bf16.vlgmr.msra.gmra.mxu1 %v1461_v28  ;;  %3272 = vmatmul.mubr.bf16.vlgmr.msra.gmra.mxu0 %v1461_v28 }
 0x824   :  { %1570 = vmatpush1.bf16.msra.mxu1 %v3670_v27  ;;  %3276 = vmatpush3.bf16.msra.mxu0 %v3671_v43 }
 0x825   :  { %1571 = vmatprep.subr.bf16.mxu1 %v3672_v29  ;;  %3277 = vmatprep.subr.bf16.mxu0 %v4932_v19 }
 0x826   :  { %1601 = vmatprep.mubr.bf16.mxu1 %v4933_v23  ;;  %3291 = vmatprep.mubr.msk.bf16.mxu0 %vm4032_vm9, %v4932_v19 }
 0x828   :  { %1572 = vmatpush1.bf16.msra.mxu1 %v3673_v18  ;;  %3278 = vmatpush3.bf16.msra.mxu0 %v3674_v26  ;;  %v3457_v26 = vld [vmem:[%s4878_s7 + $0x30] sm:$0xff]  }
 0x829   :  { %1573 = vmatprep.subr.bf16.mxu1 %v3675_v22  ;;  %3279 = vmatprep.subr.bf16.mxu0 %v4932_v19  ;;  %v3458_v22 = vld [vmem:[#allocation13] sm:$0xff]  }
 0x82c   :  { %1574 = vmatpush1.bf16.msra.mxu1 %v3676_v34  ;;  %3280 = vmatpush3.bf16.msra.mxu0 %v3677_v41  ;;  %v1680_v34 = vpack.c.bf16 %v4524_v38, %v4478_v15  ;;  %v4938_v41 = vld [vmem:[#allocation36_spill] sm:$0xff] }
 0x82d   :  { %1575 = vmatprep.subr.bf16.mxu1 %v3678_v21  ;;  %3281 = vmatprep.subr.bf16.mxu0 %v4932_v19  ;;  %v3459_v21 = vld [vmem:[%s4878_s7 + $0x28] sm:$0xff]  }
 0x830   :  { %1576 = vmatpush1.bf16.msra.mxu1 %v3679_v37  ;;  %3282 = vmatpush3.bf16.msra.mxu0 %v3680_v25  ;;  %v3460_v37 = vld [vmem:[%s4881_s10 + $0x38] sm:$0xff]   ;;  %v3461_v25 = vld [vmem:[%s4878_s7 + $0x20] sm:$0xff]  }
 0x831   :  { %1577 = vmatprep.subr.bf16.mxu1 %v3681_v33  ;;  %3283 = vmatprep.subr.bf16.mxu0 %v4932_v19  ;;  %v3462_v33 = vld [vmem:[%s4881_s10 + $0x30] sm:$0xff]  }
 0x834   :  { %1578 = vmatpush1.bf16.msra.mxu1 %v3682_v39  ;;  %3284 = vmatpush3.bf16.msra.mxu0 %v3683_v50  ;;  %v4939_v39 = vld [vmem:[#allocation37_spill] sm:$0xff]  ;;  %v4940_v50 = vld [vmem:[#allocation38_spill] sm:$0xff] }
 0x835   :  { %1579 = vmatprep.subr.bf16.mxu1 %v3684_v32  ;;  %3285 = vmatprep.subr.bf16.mxu0 %v4932_v19  ;;  %v3463_v32 = vld [vmem:[%s4878_s7 + $0x18] sm:$0xff]  }
 0x838   :  { %1580 = vmatpush1.bf16.msra.mxu1 %v3685_v35  ;;  %3286 = vmatpush3.bf16.msra.mxu0 %v3686_v47  ;;  %v3464_v35 = vld [vmem:[%s4881_s10 + $0x28] sm:$0xff]   ;;  %v3465_v47 = vld [vmem:[%s4878_s7 + $0x10] sm:$0xff]  }
 0x839   :  { %1581 = vmatprep.subr.bf16.mxu1 %v3687_v49  ;;  %3287 = vmatprep.subr.bf16.mxu0 %v4932_v19  ;;  %v3466_v49 = vld [vmem:[%s4881_s10 + $0x20] sm:$0xff]  }
 0x83c   :  { %1582 = vmatpush1.bf16.msra.mxu1 %v3688_v42  ;;  %3288 = vmatpush3.bf16.msra.mxu0 %v3689_v16  ;;  %v4941_v42 = vld [vmem:[#allocation39_spill] sm:$0xff] }
 0x83d   :  { %1583 = vmatprep.subr.bf16.mxu1 %v3690_v24  ;;  %3289 = vmatprep.subr.bf16.mxu0 %v4932_v19  ;;  %v3467_v16 = vld [vmem:[%s4878_s7 + $0x8] sm:$0xff]   ;;  %v3468_v24 = vld [vmem:[%s4881_s10 + $0x18] sm:$0xff]  }
 0x840   :  { %1584 = vmatpush1.bf16.msra.mxu1 %v3691_v36  ;;  %3290 = vmatpush3.bf16.msra.mxu0 %v3692_v20  ;;  %v3469_v36 = vld [vmem:[%s4878_s7] sm:$0xff]   ;;  %v3470_v20 = vld [vmem:[%s4881_s10 + $0x10] sm:$0xff]  }
 0x841   :  { %3295 = vmatprep.subr.bf16.mxu1 %v3455_v46  ;;  %3319 = vmatprep.subr.bf16.mxu0 %v3456_v48 }
 0x8e3   :  { %v1496_v51 = vpop.f32.mrf.mxu1  ;;  %v1537_v53 = vpop.f32.mrf.mxu0 }
 0x8e4   :  { %v1497_v54 = vadd.f32 %v1496_v51, %v4462_v30  ;;  %v1538_v14 = vadd.f32 %v1537_v53, %v4473_v59  ;;  %v3472_v51 = vld [vmem:[%s4881_s10] sm:$0xff]   ;;  %v1682_v53 = vpack.c.bf16 %v4707_v12, %v4662_v17 }
 0x8e5   :  { %v1498_v56 = vpop.f32.mrf.mxu1  ;;  %v3273_v58 = vpop.f32.mrf.mxu0 }
 0x8e6   :  { %v1543_v62 = vadd.f32 %v1497_v54, %v4935_v60  ;;  %v1499_v3 = vadd.f32 %v1498_v56, %v4468_v52  ;;  %v3473_v54 = vld [vmem:[#allocation15 + $0x8] sm:$0xff]   ;;  %v3474_v56 = vld [vmem:[#allocation15] sm:$0xff]  }
 0x8e7   :  { %v1500_v63 = vpop.f32.mrf.mxu1  ;;  %v1540_v0 = vpop.f32.mrf.mxu0 }
 0x8e8   :  { %v2874_v2 = vmul.f32 -1.442695, %v1543_v62  ;;  %v1550_v7 = vadd.f32 %v1499_v3, %v4936_v6 }
 0x8e9   :  { %v1501_v4 = vpop.f32.mrf.mxu1  ;;  %v3274_v5 = vpop.f32.mrf.mxu0 }
 0x8ea   :  { %3583 = vpow2.f32 %v2874_v2  ;;  %v2875_v8 = vmul.f32 -1.442695, %v1550_v7  ;;  %v4942_v2 = vld [vmem:[#allocation47_spill] sm:$0xff] }
 0x8ec   :  { %3585 = vpow2.f32 %v2875_v8 }
 0x8f7   :  { %v3584_v9 = vpop.eup %3583 }
 0x8f8   :  { %v1547_v10 = vadd.f32 1.0, %v3584_v9 }
 0x8f9   :  { %v3586_v11 = vpop.eup %3585 }
 0x8fa   :  { %3587 = vrcp.f32 %v1547_v10  ;;  %v1554_v13 = vadd.f32 1.0, %v3586_v11  ;;  %v4943_v10 = vld [vmem:[#allocation48_spill] sm:$0xff] }
 0x8fc   :  { %3589 = vrcp.f32 %v1554_v13 }
 0x907   :  { %v3588_v44 = vpop.eup %3587 }
 0x908   :  { %v1557_v40 = vmul.f32 %v3588_v44, %v1538_v14 }
 0x909   :  { %v3590_v61 = vpop.eup %3589 }
 0x90a   :  { %v1558_v57 = vadd.f32 %v1557_v40, %v4937_v31  ;;  %v1560_v45 = vsub.f32 1.0, %v3590_v61  ;;  %v1562_v43 = vmul.f32 %v3590_v61, %v4707_v12 }
 0x90c   :  { %3591 = vtanh.f32 %v1558_v57 }
 0x919   :  { %v3592_v28 = vpop.eup %3591 }
 0x91a   :  { %v1561_v27 = vmul.f32 %v3592_v28, %v1560_v45  ;;  %v4944_v45 = vld [vmem:[#allocation43_spill] sm:$0xff] }
 0x91c   :  { %v4731_v29 = vadd.f32 %v1562_v43, %v1561_v27 }
 0x91e   :  { %v1568_v18 = vpack.c.bf16 %v4731_v29, %v4731_v29 }
 0x920   :  { %1602 = vmatmul.mubr.bf16.vlgmr.msra.gmra.mxu1 %v1568_v18  ;;  %3292 = vmatmul.mubr.bf16.vlgmr.msra.gmra.mxu0 %v1568_v18 }
 0x921   :  { %3296 = vmatpush3.bf16.msra.mxu1 %v3455_v46  ;;  %3320 = vmatpush3.bf16.msra.mxu0 %v3456_v48  ;;  %v3471_v46 = vld [vmem:[%s4881_s10 + $0x8] sm:$0xff]   ;;  %v1681_v48 = vpack.c.bf16 %v4616_v1, %v4570_v55 }
 0x922   :  { %3311 = vmatprep.mubr.bf16.mxu1 %v1680_v34  ;;  %3323 = vmatprep.mubr.msk.bf16.mxu0 %vm327_vm4, %v4938_v41 }
 0x923   :  { %3297 = vmatprep.subr.bf16.mxu1 %v3457_v26  ;;  %3321 = vmatprep.subr.bf16.mxu0 %v3458_v22 }
 0x925   :  { %3298 = vmatpush3.bf16.msra.mxu1 %v3457_v26  ;;  %3322 = vmatpush3.bf16.msra.mxu0 %v3458_v22 }
 0x926   :  { %3299 = vmatprep.subr.bf16.mxu1 %v3459_v21  ;;  %3331 = vmatprep.subr.bf16.mxu0 %v3460_v37 }
 0x928   :  { %3324 = vmatmul.mubr.msk.bf16.vlgmr.msra.gmra.mxu0 %vm327_vm4, %v4939_v39 }
 0x929   :  { %3300 = vmatpush3.bf16.msra.mxu1 %v3459_v21  ;;  %3332 = vmatpush3.bf16.msra.mxu0 %v3460_v37 }
 0x92a   :  { %3327 = vmatprep.mubr.msk.bf16.mxu0 %vm327_vm4, %v4940_v50  ;;  %3301 = vmatprep.subr.bf16.mxu1 %v3461_v25 }
 0x92b   :  { %3333 = vmatprep.subr.bf16.mxu0 %v3462_v33 }
 0x92d   :  { %3302 = vmatpush3.bf16.msra.mxu1 %v3461_v25  ;;  %3334 = vmatpush3.bf16.msra.mxu0 %v3462_v33 }
 0x92e   :  { %3303 = vmatprep.subr.bf16.mxu1 %v3463_v32  ;;  %3335 = vmatprep.subr.bf16.mxu0 %v3464_v35 }
 0x930   :  { %3328 = vmatmul.mubr.msk.bf16.gmra.mxu0 %vm327_vm4, %v4941_v42 }
 0x931   :  { %3304 = vmatpush3.bf16.msra.mxu1 %v3463_v32  ;;  %3336 = vmatpush3.bf16.msra.mxu0 %v3464_v35 }
 0x932   :  { %3347 = vmatprep.mubr.bf16.mxu0 %v1680_v34  ;;  %3305 = vmatprep.subr.bf16.mxu1 %v3465_v47 }
 0x933   :  { %3337 = vmatprep.subr.bf16.mxu0 %v3466_v49 }
 0x935   :  { %3306 = vmatpush3.bf16.msra.mxu1 %v3465_v47  ;;  %3338 = vmatpush3.bf16.msra.mxu0 %v3466_v49 }
 0x936   :  { %3307 = vmatprep.subr.bf16.mxu1 %v3467_v16  ;;  %3339 = vmatprep.subr.bf16.mxu0 %v3468_v24 }
 0x939   :  { %3308 = vmatpush3.bf16.msra.mxu1 %v3467_v16  ;;  %3340 = vmatpush3.bf16.msra.mxu0 %v3468_v24 }
 0x93a   :  { %3309 = vmatprep.subr.bf16.mxu1 %v3469_v36  ;;  %3341 = vmatprep.subr.bf16.mxu0 %v3470_v20 }
 0x93d   :  { %3310 = vmatpush3.bf16.msra.mxu1 %v3469_v36  ;;  %3342 = vmatpush3.bf16.msra.mxu0 %v3470_v20 }
 0x93e   :  { %3343 = vmatprep.subr.bf16.mxu0 %v3471_v46 }
 0x940   :  { %3312 = vmatmul.mubr.bf16.vlgmr.msra.gmra.mxu1 %v1681_v48 }
 0x941   :  { %3315 = vmatprep.mubr.bf16.mxu1 %v1682_v53  ;;  %3344 = vmatpush3.bf16.msra.mxu0 %v3471_v46  ;;  %v2907_v46 = vld [vmem:[#allocation16] ss:$0 sm:$0xff] }
 0x942   :  { %3345 = vmatprep.subr.bf16.mxu0 %v3472_v51 }
 0x945   :  { %3346 = vmatpush3.bf16.msra.mxu0 %v3472_v51 }
 0x946   :  { %3355 = vmatprep.subr.bf16.mxu0 %v3473_v54 }
 0x948   :  { %3348 = vmatmul.mubr.bf16.vlgmr.msra.gmra.mxu0 %v1681_v48 }
 0x949   :  { %3351 = vmatprep.mubr.bf16.mxu0 %v1682_v53  ;;  %3356 = vmatpush3.bf16.msra.mxu0 %v3473_v54 }
 0x94a   :  { %3357 = vmatprep.subr.bf16.mxu0 %v3474_v56 }
 0x94d   :  { %3358 = vmatpush3.bf16.msra.mxu0 %v3474_v56 }
 0x9e0   :  { %v1603_v58 = vpop.f32.mrf.mxu1  ;;  %v1644_v60 = vpop.f32.mrf.mxu0 }
 0x9e1   :  { %v1604_v62 = vadd.f32 %v1603_v58, %v4462_v30  ;;  %v1645_v31 = vadd.f32 %v1644_v60, %v4473_v59 }
 0x9e2   :  { %v1605_v63 = vpop.f32.mrf.mxu1  ;;  %v3293_v0 = vpop.f32.mrf.mxu0 }
 0x9e3   :  { %v1650_v3 = vadd.f32 %v1604_v62, %v4942_v2  ;;  %v1606_v7 = vadd.f32 %v1605_v63, %v4468_v52 }
 0x9e4   :  { %v1607_v4 = vpop.f32.mrf.mxu1  ;;  %v1647_v5 = vpop.f32.mrf.mxu0 }
 0x9e5   :  { %v2876_v6 = vmul.f32 -1.442695, %v1650_v3  ;;  %v1657_v11 = vadd.f32 %v1606_v7, %v4943_v10 }
 0x9e6   :  { %v1608_v8 = vpop.f32.mrf.mxu1  ;;  %v3294_v9 = vpop.f32.mrf.mxu0 }
 0x9e7   :  { %3593 = vpow2.f32 %v2876_v6  ;;  %v2877_v13 = vmul.f32 -1.442695, %v1657_v11 }
 0x9e8   :  { %v3325_v59 = vpop.f32.mrf.mxu0 }
 0x9e9   :  { %3595 = vpow2.f32 %v2877_v13 }
 0x9ea   :  { %v1863_v21 = vpop.f32.mrf.mxu0 }
 0x9ec   :  { %v3326_v37 = vpop.f32.mrf.mxu0 }
 0x9ee   :  { %v4814_v25 = vpop.f32.mrf.mxu0 }
 0x9f0   :  { %v4816_v33 = vpop.f32.mrf.mxu0 }
 0x9f2   :  { %v4818_v32 = vpop.f32.mrf.mxu0 }
 0x9f4   :  { %v3594_v14 = vpop.eup %3593 }
 0x9f5   :  { %v1654_v44 = vadd.f32 1.0, %v3594_v14 }
 0x9f6   :  { %v3596_v30 = vpop.eup %3595 }
 0x9f7   :  { %3597 = vrcp.f32 %v1654_v44  ;;  %v1661_v40 = vadd.f32 1.0, %v3596_v30 }
 0x9f9   :  { %3599 = vrcp.f32 %v1661_v40 }
 0xa00   :  { %v3313_v24 = vpop.f32.mrf.mxu1 }
 0xa02   :  { %v1786_v51 = vpop.f32.mrf.mxu1 }
 0xa04   :  { %v3598_v57 = vpop.eup %3597  ;;  %v3314_v0 = vpop.f32.mrf.mxu1 }
 0xa05   :  { %v1664_v61 = vmul.f32 %v3598_v57, %v1645_v31 }
 0xa06   :  { %v3600_v52 = vpop.eup %3599  ;;  %v1789_v10 = vpop.f32.mrf.mxu1 }
 0xa07   :  { %v1665_v28 = vadd.f32 %v1664_v61, %v4944_v45  ;;  %v1667_v27 = vsub.f32 1.0, %v3600_v52  ;;  %v1669_v26 = vmul.f32 %v3600_v52, %v4731_v29  ;;  %v1872_v45 = vadd.f32 %v3325_v59, %v3313_v24  ;;  %v2892_v52 = vld [vmem:[%s4879_s8] ss:$0 sm:$0xff] }
 0xa09   :  { %3601 = vtanh.f32 %v1665_v28 }
 0xa16   :  { %v3602_v43 = vpop.eup %3601 }
 0xa17   :  { %v1668_v18 = vmul.f32 %v3602_v43, %v1667_v27 }
 0xa19   :  { %v4801_v22 = vadd.f32 %v1669_v26, %v1668_v18  ;;  %v1864_v26 = vadd.f32 %v1863_v21, %v1786_v51 }
 0xa1b   :  { %v1683_v34 = vpack.c.bf16 %v4801_v22, %v4731_v29  ;;  %v1901_v59 = vadd.f32 %v2892_v52, %v1864_v26 }
 0xa1d   :  { %3316 = vmatmul.mubr.bf16.gmra.mxu1 %v1683_v34  ;;  %3352 = vmatmul.mubr.bf16.gmra.mxu0 %v1683_v34 }
 0xa1e   :  { %3359 = vmatprep.mubr.msk.bf16.mxu0 %vm327_vm4, %v4938_v41  ;;  %2504 = vmatprep.mubr.bf16.mxu1 %v4933_v23  ;;  %v4820_v41 = vpop.f32.mrf.mxu0 }
 0xa20   :  { %v4822_v23 = vpop.f32.mrf.mxu0 }
 0xa25   :  { %3360 = vmatmul.mubr.msk.bf16.vlgmr.msra.gmra.mxu0 %vm327_vm4, %v4939_v39  ;;  %v3349_v39 = vpop.f32.mrf.mxu0 }
 0xa26   :  { %3363 = vmatprep.mubr.msk.bf16.mxu0 %vm327_vm4, %v4940_v50 }
 0xa27   :  { %v2011_v35 = vpop.f32.mrf.mxu0 }
 0xa29   :  { %v3350_v47 = vpop.f32.mrf.mxu0 }
 0xa2b   :  { %v2014_v50 = vpop.f32.mrf.mxu0 }
 0xa2d   :  { %3364 = vmatmul.mubr.msk.bf16.gmra.mxu0 %vm327_vm4, %v4941_v42 }
 0xadd   :  { %v3353_v49 = vpop.f32.mrf.mxu0  ;;  %v3317_v30 = vpop.f32.mrf.mxu1 }
 0xadf   :  { %v2027_v16 = vpop.f32.mrf.mxu0  ;;  %v1802_v34 = vpop.f32.mrf.mxu1 }
 0xae0   :  { %v1880_v21 = vadd.f32 %v4818_v32, %v1802_v34 }
 0xae1   :  { %v3354_v42 = vpop.f32.mrf.mxu0  ;;  %v3318_v24 = vpop.f32.mrf.mxu1 }
 0xae3   :  { %v2030_v36 = vpop.f32.mrf.mxu0 }
 0xae5   :  { %v3361_v20 = vpop.f32.mrf.mxu0 }
 0xae6   :  { %v2097_v48 = vadd.f32 %v3361_v20, %v3349_v39 }
 0xae7   :  { %v2088_v53 = vpop.f32.mrf.mxu0 }
 0xae8   :  { %v2128_v54 = vadd.f32 %v2907_v46, %v2097_v48  ;;  %v2089_v56 = vadd.f32 %v2088_v53, %v2011_v35 }
 0xae9   :  { %v3362_v58 = vpop.f32.mrf.mxu0 }
 0xaea   :  { %v2910_v60 = vmul.f32 -1.442695, %v2128_v54  ;;  %v2126_v62 = vadd.f32 %v2907_v46, %v2089_v56  ;;  %v2100_v63 = vadd.f32 %v3362_v58, %v3350_v47  ;;  %v1903_v47 = vadd.f32 %v2892_v52, %v1872_v45 }
 0xaeb   :  { %v2091_v2 = vpop.f32.mrf.mxu0  ;;  %v1905_v58 = vadd.f32 %v2892_v52, %v1880_v21 }
 0xaec   :  { %3603 = vpow2.f32 %v2910_v60  ;;  %v2908_v3 = vmul.f32 -1.442695, %v2126_v62  ;;  %v2129_v4 = vadd.f32 %v2907_v46, %v2100_v63  ;;  %v2092_v5 = vadd.f32 %v2091_v2, %v2014_v50 }
 0xaed   :  { %v3365_v6 = vpop.f32.mrf.mxu0  ;;  %v1875_v50 = vadd.f32 %v3326_v37, %v3314_v0  ;;  %v1805_v37 = vpop.f32.mrf.mxu1 }
 0xaee   :  { %3605 = vpow2.f32 %v2908_v3  ;;  %v2911_v7 = vmul.f32 -1.442695, %v2129_v4  ;;  %v2127_v8 = vadd.f32 %v2907_v46, %v2092_v5  ;;  %v2113_v9 = vadd.f32 %v3365_v6, %v3353_v49 }
 0xaef   :  { %v2104_v11 = vpop.f32.mrf.mxu0  ;;  %v1904_v53 = vadd.f32 %v2892_v52, %v1875_v50  ;;  %v1883_v60 = vadd.f32 %v4822_v23, %v1805_v37  ;;  %v1891_v3 = vadd.f32 %v4820_v41, %v3318_v24  ;;  %v3478_v37 = vld [vmem:[#allocation19 + $0x60] ss:$8 sps:$4 sm:$0xff]  }
 0xaf0   :  { %3607 = vpow2.f32 %v2911_v7  ;;  %v2909_v13 = vmul.f32 -1.442695, %v2127_v8  ;;  %v2132_v14 = vadd.f32 %v2907_v46, %v2113_v9  ;;  %v2105_v44 = vadd.f32 %v2104_v11, %v2027_v16  ;;  %v2916_v11 = vld [vmem:[#allocation18] ss:$0 sm:$0xff] }
 0xaf1   :  { %v3366_v40 = vpop.f32.mrf.mxu0  ;;  %v1906_v4 = vadd.f32 %v2892_v52, %v1883_v60  ;;  %v1908_v8 = vadd.f32 %v2892_v52, %v1891_v3 }
 0xaf2   :  { %3609 = vpow2.f32 %v2909_v13  ;;  %v2914_v31 = vmul.f32 -1.442695, %v2132_v14  ;;  %v2130_v57 = vadd.f32 %v2907_v46, %v2105_v44  ;;  %v2116_v61 = vadd.f32 %v3366_v40, %v3354_v42 }
 0xaf3   :  { %v2107_v28 = vpop.f32.mrf.mxu0  ;;  %v1867_v42 = vadd.f32 %v4814_v25, %v1789_v10  ;;  %v1888_v25 = vadd.f32 %v4816_v33, %v3317_v30 }
 0xaf4   :  { %3611 = vpow2.f32 %v2914_v31  ;;  %v2912_v27 = vmul.f32 -1.442695, %v2130_v57  ;;  %v2133_v43 = vadd.f32 %v2907_v46, %v2116_v61  ;;  %v2108_v18 = vadd.f32 %v2107_v28, %v2030_v36 }
 0xaf5   :  { %v1907_v2 = vadd.f32 %v2892_v52, %v1888_v25 }
 0xaf6   :  { %3613 = vpow2.f32 %v2912_v27  ;;  %v2915_v39 = vmul.f32 -1.442695, %v2133_v43  ;;  %v2131_v35 = vadd.f32 %v2907_v46, %v2108_v18  ;;  %v1902_v46 = vadd.f32 %v2892_v52, %v1867_v42 }
 0xaf8   :  { %3615 = vpow2.f32 %v2915_v39  ;;  %v2913_v49 = vmul.f32 -1.442695, %v2131_v35 }
 0xaf9   :  { %v3604_v16 = vpop.eup %3603 }
 0xafa   :  { %v2168_v20 = vadd.f32 1.0, %v3604_v16  ;;  %3617 = vpow2.f32 %v2913_v49 }
 0xafb   :  { %v3606_v48 = vpop.eup %3605  ;;  %3619 = vtanh.f32 %v1903_v47 }
 0xafc   :  { %3621 = vrcp.f32 %v2168_v20  ;;  %v2166_v36 = vadd.f32 1.0, %v3606_v48 }
 0xafd   :  { %v3608_v51 = vpop.eup %3607  ;;  %3623 = vtanh.f32 %v1901_v59 }
 0xafe   :  { %3625 = vrcp.f32 %v2166_v36  ;;  %v2169_v54 = vadd.f32 1.0, %v3608_v51  ;;  %v3475_v36 = vld [vmem:[#allocation19 + $0x70] ss:$8 sps:$4 sm:$0xff]   ;;  %v3477_v51 = vld [vmem:[#allocation19 + $0x74] ss:$8 sps:$4 sm:$0xff]  }
 0xaff   :  { %v3610_v56 = vpop.eup %3609  ;;  %3627 = vtanh.f32 %v1904_v53  ;;  %2472 = vmatprep.subr.bf16.mxu1 %v3477_v51 }
 0xb00   :  { %3629 = vrcp.f32 %v2169_v54  ;;  %v2167_v62 = vadd.f32 1.0, %v3610_v56  ;;  %2473 = vmatpush1.bf16.msra.mxu1 %v3475_v36  ;;  %v3483_v54 = vld [vmem:[#allocation19 + $0x54] ss:$8 sps:$4 sm:$0xff]   ;;  %v3481_v56 = vld [vmem:[#allocation19 + $0x50] ss:$8 sps:$4 sm:$0xff]  }
 0xb01   :  { %v3612_v63 = vpop.eup %3611  ;;  %3631 = vtanh.f32 %v1902_v46  ;;  %v3480_v46 = vld [vmem:[#allocation19 + $0x64] ss:$8 sps:$4 sm:$0xff]  }
 0xb02   :  { %3633 = vrcp.f32 %v2167_v62  ;;  %v2172_v32 = vadd.f32 1.0, %v3612_v63  ;;  %2474 = vmatprep.subr.bf16.mxu1 %v3480_v46 }
 0xb03   :  { %v3614_v0 = vpop.eup %3613  ;;  %3635 = vtanh.f32 %v1905_v58 }
 0xb04   :  { %v2170_v5 = vadd.f32 1.0, %v3614_v0  ;;  %3637 = vrcp.f32 %v2172_v32  ;;  %2475 = vmatpush1.bf16.msra.mxu1 %v3478_v37  ;;  %v2917_v32 = vld [vmem:[#allocation4] ss:$0 sm:$0xff] }
 0xb05   :  { %v3616_v6 = vpop.eup %3615  ;;  %2476 = vmatprep.subr.bf16.mxu1 %v3483_v54 }
 0xb06   :  { %3639 = vrcp.f32 %v2170_v5  ;;  %v2173_v33 = vadd.f32 1.0, %v3616_v6 }
 0xb07   :  { %v3618_v7 = vpop.eup %3617  ;;  %3641 = vtanh.f32 %v1907_v2 }
 0xb08   :  { %v3620_v23 = vpop.eup %3619  ;;  %3643 = vtanh.f32 %v1906_v4  ;;  %v2171_v9 = vadd.f32 1.0, %v3618_v7  ;;  %2477 = vmatpush1.bf16.msra.mxu1 %v3481_v56 }
 0xb09   :  { %v3622_v10 = vpop.eup %3621  ;;  %3645 = vrcp.f32 %v2173_v33 }
 0xb0a   :  { %v3624_v13 = vpop.eup %3623  ;;  %3647 = vrcp.f32 %v2171_v9  ;;  %v2192_v14 = vmul.f32 %v3622_v10, %v3620_v23 }
 0xb0b   :  { %v3626_v44 = vpop.eup %3625  ;;  %3649 = vtanh.f32 %v1908_v8 }
 0xb0c   :  { %v3628_v41 = vpop.eup %3627  ;;  %v2207_v30 = vmul.f32 %v2916_v11, %v2192_v14  ;;  %v2190_v40 = vmul.f32 %v3626_v44, %v3624_v13 }
 0xb0d   :  { %v3630_v31 = vpop.eup %3629 }
 0xb0e   :  { %v3632_v57 = vpop.eup %3631  ;;  %2217 = vadd.xlane.f32.xlu0 %v2207_v30  ;;  %v2205_v45 = vmul.f32 %v2916_v11, %v2190_v40  ;;  %v2193_v52 = vmul.f32 %v3630_v31, %v3628_v41 }
 0xb0f   :  { %v3634_v61 = vpop.eup %3633 }
 0xb10   :  { %v2191_v28 = vmul.f32 %v3634_v61, %v3632_v57  ;;  %v3636_v27 = vpop.eup %3635  ;;  %v2208_v39 = vmul.f32 %v2916_v11, %v2193_v52 }
 0xb11   :  { %v3638_v43 = vpop.eup %3637 }
 0xb12   :  { %2213 = vadd.xlane.f32.xlu0 %v2205_v45  ;;  %v2206_v18 = vmul.f32 %v2916_v11, %v2191_v28 }
 0xb13   :  { %v3640_v26 = vpop.eup %3639 }
 0xb14   :  { %v3642_v34 = vpop.eup %3641  ;;  %2215 = vadd.xlane.f32.xlu1 %v2206_v18  ;;  %v2194_v35 = vmul.f32 %v3640_v26, %v3636_v27 }
 0xb15   :  { %v3644_v47 = vpop.eup %3643  ;;  %v2196_v16 = vmul.f32 %v3642_v34, %v3638_v43 }
 0xb16   :  { %v3646_v50 = vpop.eup %3645  ;;  %2219 = vadd.xlane.f32.xlu0 %v2208_v39  ;;  %v2209_v49 = vmul.f32 %v2916_v11, %v2194_v35 }
 0xb17   :  { %v3648_v59 = vpop.eup %3647  ;;  %v2211_v20 = vmul.f32 %v2916_v11, %v2196_v16 }
 0xb18   :  { %2221 = vadd.xlane.f32.xlu1 %v2209_v49  ;;  %v2195_v42 = vmul.f32 %v3648_v59, %v3644_v47  ;;  %v3650_v24 = vpop.eup %3649 }
 0xb19   :  { %v2197_v53 = vmul.f32 %v3650_v24, %v3646_v50 }
 0xb1a   :  { %v2210_v48 = vmul.f32 %v2916_v11, %v2195_v42 }
 0xb1b   :  { %v2212_v21 = vmul.f32 %v2916_v11, %v2197_v53 }
 0xb1c   :  { %2225 = vadd.xlane.f32.xlu1 %v2211_v20  ;;  %2223 = vadd.xlane.f32.xlu0 %v2210_v48 }
 0xb20   :  { %2227 = vadd.xlane.f32.xlu0 %v2212_v21 }
 0xb97   :  { %v2218_v25 = vpop.xlane.xlu0 %2217 }
 0xb98   :  { %v2238_v33 = vadd.f32 %v2917_v32, %v2218_v25 }
 0xb9a   :  { %v2247_v41 = vsel %vm2244_vm10, %v2238_v33, -inf }
 0xb9b   :  { %v2214_v58 = vpop.xlane.xlu0 %2213 }
 0xb9c   :  { %v2236_v7 = vadd.f32 %v2917_v32, %v2214_v58 }
 0xb9d   :  { %v2216_v60 = vpop.xlane.xlu1 %2215 }
 0xb9e   :  { %v2237_v3 = vadd.f32 %v2917_v32, %v2216_v60  ;;  %v2245_v30 = vsel %vm2244_vm10, %v2236_v7, -inf }
 0xb9f   :  { %v2220_v62 = vpop.xlane.xlu0 %2219 }
 0xba0   :  { %v2239_v23 = vadd.f32 %v2917_v32, %v2220_v62  ;;  %v2246_v10 = vsel %vm2244_vm10, %v2237_v3, -inf }
 0xba1   :  { %v2222_v63 = vpop.xlane.xlu1 %2221 }
 0xba2   :  { %v2240_v4 = vadd.f32 %v2917_v32, %v2222_v63  ;;  %v2248_v40 = vsel %vm2244_vm10, %v2239_v23, -inf }
 0xba4   :  { %v2249_v11 = vsel %vm2244_vm10, %v2240_v4, -inf }
 0xba5   :  { %v2226_v0 = vpop.xlane.xlu1 %2225  ;;  %v2224_v2 = vpop.xlane.xlu0 %2223  ;;  %v2250_v57 = vmax.f32 %v2245_v30, %v2249_v11 }
 0xba6   :  { %v2242_v5 = vadd.f32 %v2917_v32, %v2226_v0  ;;  %v2241_v6 = vadd.f32 %v2917_v32, %v2224_v2 }
 0xba8   :  { %v2251_v8 = vsel %vm2244_vm10, %v2241_v6, -inf  ;;  %v2253_v13 = vsel %vm2244_vm10, %v2242_v5, -inf }
 0xba9   :  { %v2228_v9 = vpop.xlane.xlu0 %2227  ;;  %v2252_v44 = vmax.f32 %v2246_v10, %v2251_v8  ;;  %v2254_v61 = vmax.f32 %v2247_v41, %v2253_v13  ;;  %v3486_v10 = vld [vmem:[#allocation19 + $0x44] ss:$8 sps:$4 sm:$0xff]  }
 0xbaa   :  { %v2243_v14 = vadd.f32 %v2917_v32, %v2228_v9  ;;  %2478 = vmatprep.subr.bf16.mxu1 %v3486_v10  ;;  %v2380_v10 = vld [vmem:[#allocation21] sm:$0x3] }
 0xbab   :  { %v2257_v28 = vmax.f32 %v2250_v57, %v2252_v44  ;;  %v3489_v44 = vld [vmem:[#allocation19 + $0x34] ss:$8 sps:$4 sm:$0xff]  }
 0xbac   :  { %v2255_v31 = vsel %vm2244_vm10, %v2243_v14, -inf }
 0xbad   :  { %v2256_v45 = vmax.f32 %v2248_v40, %v2255_v31  ;;  %v3487_v40 = vld [vmem:[#allocation19 + $0x30] ss:$8 sps:$4 sm:$0xff]   ;;  %v3492_v31 = vld [vmem:[#allocation19 + $0x24] ss:$8 sps:$4 sm:$0xff]  }
 0xbaf   :  { %v2258_v52 = vmax.f32 %v2254_v61, %v2256_v45  ;;  %v3490_v45 = vld [vmem:[#allocation19 + $0x20] ss:$8 sps:$4 sm:$0xff]  }
 0xbb1   :  { %v2259_v27 = vmax.f32 %v2257_v28, %v2258_v52  ;;  %v3495_v28 = vld [vmem:[#allocation19 + $0x14] ss:$8 sps:$4 sm:$0xff]  }
 0xbb3   :  { %v2260_v43 = vsub.f32 %v2236_v7, %v2259_v27  ;;  %v2262_v18 = vsub.f32 %v2238_v33, %v2259_v27  ;;  %v2261_v34 = vsub.f32 %v2237_v3, %v2259_v27  ;;  %v2263_v39 = vsub.f32 %v2239_v23, %v2259_v27 }
 0xbb4   :  { %v2264_v47 = vsub.f32 %v2240_v4, %v2259_v27  ;;  %v2265_v49 = vsub.f32 %v2241_v6, %v2259_v27  ;;  %v2266_v59 = vsub.f32 %v2242_v5, %v2259_v27  ;;  %v2267_v24 = vsub.f32 %v2243_v14, %v2259_v27  ;;  %v3484_v14 = vld [vmem:[#allocation19 + $0x40] ss:$8 sps:$4 sm:$0xff]   ;;  %v3493_v27 = vld [vmem:[#allocation19 + $0x10] ss:$8 sps:$4 sm:$0xff]  }
 0xbb5   :  { %v2268_v26 = vmul.f32 1.442695, %v2260_v43  ;;  %v2272_v35 = vmul.f32 1.442695, %v2262_v18  ;;  %v2270_v50 = vmul.f32 1.442695, %v2261_v34  ;;  %2479 = vmatpush1.bf16.msra.mxu1 %v3484_v14 }
 0xbb6   :  { %v2274_v16 = vmul.f32 1.442695, %v2263_v39  ;;  %v2276_v42 = vmul.f32 1.442695, %v2264_v47  ;;  %v2278_v20 = vmul.f32 1.442695, %v2265_v49  ;;  %2480 = vmatprep.subr.bf16.mxu1 %v3489_v44 }
 0xbb7   :  { %3651 = vpow2.f32 %v2268_v26  ;;  %v2280_v48 = vmul.f32 1.442695, %v2266_v59  ;;  %v2282_v53 = vmul.f32 1.442695, %v2267_v24  ;;  %v3498_v43 = vld [vmem:[#allocation19 + $0x4] ss:$8 sps:$4 sm:$0xff]  }
 0xbb8   :  { %3653 = vpow2.f32 %v2272_v35  ;;  %v3496_v26 = vld [vmem:[#allocation19] ss:$8 sps:$4 sm:$0xff]   ;;  %v3501_v35 = vld [vmem:[#allocation22 + $0x70] sm:$0xff]  }
 0xbb9   :  { %3655 = vpow2.f32 %v2270_v50  ;;  %2481 = vmatpush1.bf16.msra.mxu1 %v3487_v40  ;;  %v3499_v34 = vld [vmem:[#allocation22 + $0x78] sm:$0xff]   ;;  %v3502_v47 = vld [vmem:[#allocation22 + $0x30] sm:$0xff]   ;;  %v3503_v50 = vld [vmem:[#allocation22 + $0x68] sm:$0xff]  }
 0xbba   :  { %3657 = vpow2.f32 %v2274_v16  ;;  %2482 = vmatprep.subr.bf16.mxu1 %v3492_v31  ;;  %v3500_v39 = vld [vmem:[#allocation22 + $0x38] sm:$0xff]   ;;  %3080 = vmatprep.subr.bf16.mxu0 %v3499_v34  ;;  %v3504_v49 = vld [vmem:[#allocation22 + $0x28] sm:$0xff]   ;;  %v3505_v16 = vld [vmem:[#allocation22 + $0x60] sm:$0xff]  }
 0xbbb   :  { %3659 = vpow2.f32 %v2276_v42  ;;  %3081 = vmatpush3.bf16.msra.mxu0 %v3500_v39  ;;  %v3506_v59 = vld [vmem:[#allocation22 + $0x20] sm:$0xff]   ;;  %v3507_v42 = vld [vmem:[#allocation22 + $0x58] sm:$0xff]   ;;  %v4946_v14 = vld [vmem:[#allocation41_spill] sm:$0xff] }
 0xbbc   :  { %3661 = vpow2.f32 %v2278_v20  ;;  %3082 = vmatprep.subr.bf16.mxu0 %v3501_v35  ;;  %v3508_v24 = vld [vmem:[#allocation22 + $0x18] sm:$0xff]   ;;  %v3509_v20 = vld [vmem:[#allocation22 + $0x50] sm:$0xff]   ;;  %v2389_v44 = vrot.slane %v2380_v10, %v4946_v14  ;;  %v2934_v39 = vld [vmem:[#allocation24] ss:$0 sm:$0xff] }
 0xbbd   :  { %3663 = vpow2.f32 %v2280_v48  ;;  %2483 = vmatpush1.bf16.msra.mxu1 %v3490_v45  ;;  %v3510_v48 = vld [vmem:[#allocation22 + $0x10] sm:$0xff]  }
 0xbbe   :  { %3665 = vpow2.f32 %v2282_v53  ;;  %2484 = vmatprep.subr.bf16.mxu1 %v3495_v28 }
 0xbbf   :  { %3083 = vmatpush3.bf16.msra.mxu0 %v3502_v47 }
 0xbc0   :  { %3084 = vmatprep.subr.bf16.mxu0 %v3503_v50 }
 0xbc1   :  { %2485 = vmatpush1.bf16.msra.mxu1 %v3493_v27 }
 0xbc2   :  { %2486 = vmatprep.subr.bf16.mxu1 %v3498_v43  ;;  %v3520_v43 = vld [vmem:[#allocation25 + $0x10] sm:$0xff]  }
 0xbc3   :  { %3085 = vmatpush3.bf16.msra.mxu0 %v3504_v49 }
 0xbc4   :  { %v3652_v21 = vpop.eup %3651  ;;  %3086 = vmatprep.subr.bf16.mxu0 %v3505_v16 }
 0xbc5   :  { %v3654_v36 = vpop.eup %3653  ;;  %v2284_v51 = vsel %vm2244_vm10, %v3652_v21, 0.0  ;;  %2487 = vmatpush1.bf16.msra.mxu1 %v3496_v26  ;;  %v3522_v26 = vld [vmem:[#allocation25] sm:$0xff]  }
 0xbc6   :  { %v3656_v46 = vpop.eup %3655  ;;  %v2287_v25 = vsel %vm2244_vm10, %v3654_v36, 0.0  ;;  %3367 = vmatprep.subr.bf16.mxu1 %v4932_v19 }
 0xbc7   :  { %v2285_v37 = vsel %vm2244_vm10, %v3656_v46, 0.0  ;;  %v3658_v54 = vpop.eup %3657  ;;  %3087 = vmatpush3.bf16.msra.mxu0 %v3506_v59 }
 0xbc8   :  { %v2286_v56 = vadd.f32 %v2285_v37, %v2284_v51  ;;  %v3660_v58 = vpop.eup %3659  ;;  %v2289_v62 = vsel %vm2244_vm10, %v3658_v54, 0.0  ;;  %3088 = vmatprep.subr.bf16.mxu0 %v3507_v42 }
 0xbc9   :  { %v3662_v63 = vpop.eup %3661  ;;  %v2291_v0 = vsel %vm2244_vm10, %v3660_v58, 0.0 }
 0xbca   :  { %v2288_v60 = vadd.f32 %v2287_v25, %v2286_v56  ;;  %v3664_v2 = vpop.eup %3663  ;;  %v2293_v4 = vsel %vm2244_vm10, %v3662_v63, 0.0 }
 0xbcb   :  { %v3666_v5 = vpop.eup %3665  ;;  %v2295_v33 = vsel %vm2244_vm10, %v3664_v2, 0.0  ;;  %3089 = vmatpush3.bf16.msra.mxu0 %v3508_v24  ;;  %v2951_v24 = vld [vmem:[#allocation27] ss:$0 sm:$0xff] }
 0xbcc   :  { %v2290_v32 = vadd.f32 %v2289_v62, %v2288_v60  ;;  %v2297_v23 = vsel %vm2244_vm10, %v3666_v5, 0.0  ;;  %3090 = vmatprep.subr.bf16.mxu0 %v3509_v20 }
 0xbce   :  { %v2292_v3 = vadd.f32 %v2291_v0, %v2290_v32 }
 0xbcf   :  { %3091 = vmatpush3.bf16.msra.mxu0 %v3510_v48 }
 0xbd0   :  { %v2294_v6 = vadd.f32 %v2293_v4, %v2292_v3 }
 0xbd2   :  { %v2296_v7 = vadd.f32 %v2295_v33, %v2294_v6 }
 0xbd4   :  { %v2298_v8 = vadd.f32 %v2297_v23, %v2296_v7  ;;  %v3513_v7 = vld [vmem:[#allocation22 + $0x40] sm:$0xff]  }
 0xbd5   :  { %v3514_v23 = vld [vmem:[#allocation22] sm:$0xff]  }
 0xbd6   :  { %3667 = vrcp.f32 %v2298_v8  ;;  %v3518_v8 = vld [vmem:[#allocation25 + $0x20] sm:$0xff]  }
 0xbe3   :  { %v3668_v9 = vpop.eup %3667 }
 0xbe4   :  { %v2301_v11 = vmul.f32 %v3668_v9, %v3656_v46  ;;  %v2300_v13 = vmul.f32 %v3668_v9, %v3652_v21  ;;  %v2304_v41 = vmul.f32 %v3668_v9, %v3660_v58  ;;  %v2302_v30 = vmul.f32 %v3668_v9, %v3654_v36 }
 0xbe5   :  { %v2306_v57 = vmul.f32 %v3668_v9, %v3664_v2  ;;  %v2303_v61 = vmul.f32 %v3668_v9, %v3658_v54  ;;  %v2305_v52 = vmul.f32 %v3668_v9, %v3662_v63  ;;  %v2307_v18 = vmul.f32 %v3668_v9, %v3666_v5  ;;  %v3519_v9 = vld [vmem:[#allocation25 + $0x18] sm:$0xff]  }
 0xbe6   :  { %2315 = vperm.xlu0 %3411, %v2301_v11   ;;  %2310 = vperm.xlu1 %3412, %v2300_v13   ;;  %v4945_v11 = vld [vmem:[#allocation40_spill] sm:$0xff] }
 0xbe7   :  { %v2385_v13 = vrot.slane %v2380_v10, %v4945_v11 }
 0xbea   :  { %2330 = vperm.xlu0 %3411, %v2304_v41   ;;  %2320 = vperm.xlu1 %3412, %v2302_v30  }
 0xbee   :  { %2340 = vperm.xlu0 %3411, %v2306_v57   ;;  %2325 = vperm.xlu1 %3412, %v2303_v61  }
 0xbf2   :  { %2335 = vperm.xlu1 %3412, %v2305_v52  }
 0xbf6   :  { %2345 = vperm.xlu1 %3412, %v2307_v18   ;;  %v3521_v18 = vld [vmem:[#allocation25 + $0x8] sm:$0xff]  }
 0xc61   :  { %v2316_v53 = vpop.permute.xlu0 %2315  ;;  %v2311_v21 = vpop.permute.xlu1 %2310 }
 0xc62   :  { %v2349_v36 = vmul.f32 %v2316_v53, %v4524_v38  ;;  %v2348_v51 = vmul.f32 %v2311_v21, %v4478_v15 }
 0xc64   :  { %v2356_v56 = vadd.f32 %v2349_v36, %v2348_v51 }
 0xc65   :  { %v2321_v46 = vpop.permute.xlu1 %2320  ;;  %v2331_v54 = vpop.permute.xlu0 %2330 }
 0xc66   :  { %v2350_v37 = vmul.f32 %v2321_v46, %v4570_v55  ;;  %v2352_v62 = vmul.f32 %v2331_v54, %v4662_v17  ;;  %v3512_v17 = vld [vmem:[#allocation22 + $0x8] sm:$0xff]  }
 0xc68   :  { %v2357_v58 = vadd.f32 %v2356_v56, %v2350_v37 }
 0xc69   :  { %v2326_v25 = vpop.permute.xlu1 %2325  ;;  %v2341_v32 = vpop.permute.xlu0 %2340 }
 0xc6a   :  { %v2351_v60 = vmul.f32 %v2326_v25, %v4616_v1  ;;  %v2354_v38 = vmul.f32 %v2341_v32, %v4731_v29  ;;  %v3511_v1 = vld [vmem:[#allocation22 + $0x48] sm:$0xff]   ;;  %v3516_v29 = vld [vmem:[#allocation25 + $0x30] sm:$0xff]  }
 0xc6b   :  { %3092 = vmatprep.subr.bf16.mxu0 %v3511_v1 }
 0xc6c   :  { %v2358_v63 = vadd.f32 %v2357_v58, %v2351_v60  ;;  %3093 = vmatpush3.bf16.msra.mxu0 %v3512_v17 }
 0xc6d   :  { %v2336_v0 = vpop.permute.xlu1 %2335  ;;  %3094 = vmatprep.subr.bf16.mxu0 %v3513_v7 }
 0xc6e   :  { %v2359_v2 = vadd.f32 %v2358_v63, %v2352_v62  ;;  %v2353_v3 = vmul.f32 %v2336_v0, %v4707_v12  ;;  %v3515_v12 = vld [vmem:[#allocation25 + $0x38] sm:$0xff]  }
 0xc70   :  { %v2360_v15 = vadd.f32 %v2359_v2, %v2353_v3  ;;  %3095 = vmatpush3.bf16.msra.mxu0 %v3514_v23 }
 0xc71   :  { %v2346_v4 = vpop.permute.xlu1 %2345 }
 0xc72   :  { %v2361_v5 = vadd.f32 %v2360_v15, %v2354_v38  ;;  %v2355_v55 = vmul.f32 %v2346_v4, %v4801_v22  ;;  %v3517_v22 = vld [vmem:[#allocation25 + $0x28] sm:$0xff]  }
 0xc74   :  { %v2362_v6 = vadd.f32 %v2361_v5, %v2355_v55 }
 0xc76   :  { %v2363_v33 = vpack.c.bf16 %v2362_v6, %v2362_v6 }
 0xc78   :  { %2505 = vmatmul.mubr.bf16.vlgmr.msra.gmra.mxu1 %v2363_v33 }
 0xc79   :  { %3383 = vmatprep.mubr.msk.bf16.mxu1 %vm4032_vm9, %v4932_v19  ;;  %3368 = vmatpush3.bf16.msra.mxu1 %v3515_v12 }
 0xc7a   :  { %3369 = vmatprep.subr.bf16.mxu1 %v4932_v19 }
 0xc7d   :  { %3370 = vmatpush3.bf16.msra.mxu1 %v3516_v29 }
 0xc7e   :  { %3371 = vmatprep.subr.bf16.mxu1 %v4932_v19 }
 0xc81   :  { %3372 = vmatpush3.bf16.msra.mxu1 %v3517_v22 }
 0xc82   :  { %3373 = vmatprep.subr.bf16.mxu1 %v4932_v19 }
 0xc85   :  { %3374 = vmatpush3.bf16.msra.mxu1 %v3518_v8 }
 0xc86   :  { %3375 = vmatprep.subr.bf16.mxu1 %v4932_v19 }
 0xc89   :  { %3376 = vmatpush3.bf16.msra.mxu1 %v3519_v9 }
 0xc8a   :  { %3377 = vmatprep.subr.bf16.mxu1 %v4932_v19 }
 0xc8d   :  { %3378 = vmatpush3.bf16.msra.mxu1 %v3520_v43 }
 0xc8e   :  { %3379 = vmatprep.subr.bf16.mxu1 %v4932_v19 }
 0xc91   :  { %3380 = vmatpush3.bf16.msra.mxu1 %v3521_v18 }
 0xc92   :  { %3381 = vmatprep.subr.bf16.mxu1 %v4932_v19 }
 0xc95   :  { %3382 = vmatpush3.bf16.msra.mxu1 %v3522_v26 }
 0xd38   :  { %v2506_v41 = vpop.f32.mrf.mxu1 }
 0xd39   :  { %v2507_v30 = vadd.f32 %v2506_v41, %v2385_v13 }
 0xd3a   :  { %v2508_v40 = vpop.f32.mrf.mxu1 }
 0xd3b   :  { %v2509_v31 = vadd.f32 %v2508_v40, %v2389_v44  ;;  %v2513_v57 = vmax.f32 %v2507_v30, 0.0 }
 0xd3c   :  { %v2510_v61 = vpop.f32.mrf.mxu1 }
 0xd3d   :  { %v2514_v45 = vmax.f32 %v2509_v31, 0.0  ;;  %v2515_v27 = vpack.c.bf16 %v2513_v57, %v2513_v57 }
 0xd3e   :  { %v2511_v28 = vpop.f32.mrf.mxu1 }
 0xd3f   :  { %v2516_v52 = vpack.c.bf16 %v2514_v45, %v2514_v45 }
 0xd41   :  { %2684 = vmatprep.mubr.bf16.mxu0 %v2516_v52 }
 0xd42   :  { %2685 = vmatmul.mubr.bf16.vlgmr.msra.gmra.mxu0 %v2515_v27 }
 0xe02   :  { %v3096_v34 = vpop.f32.mrf.mxu0 }
 0xe04   :  { %v3097_v35 = vpop.f32.mrf.mxu0 }
 0xe05   :  { %v3098_v47 = vadd.f32 %v3097_v35, %v3096_v34 }
 0xe06   :  { %v3099_v50 = vpop.f32.mrf.mxu0 }
 0xe07   :  { %v2687_v49 = vadd.f32 %v3098_v47, %v2934_v39 }
 0xe08   :  { %v3100_v16 = vpop.f32.mrf.mxu0 }
 0xe09   :  { %v2692_v59 = vmax.f32 %v2687_v49, 0.0 }
 0xe0b   :  { %v2693_v42 = vpack.c.bf16 %v2692_v59, %v2692_v59 }
 0xe0d   :  { %3384 = vmatmul.mubr.bf16.vlgmr.msra.gmra.mxu1 %v2693_v42 }
 0xecd   :  { %v2799_v20 = vpop.f32.mrf.mxu1 }
 0xece   :  { %v2800_v48 = vadd.f32 %v2951_v24, %v2799_v20 }
 0xecf   :  { %v3385_v53 = vpop.f32.mrf.mxu1 }
 0xed0   :  { %2805 = vst [vmem:[%s4891_s20] sm:$0xff] %v2800_v48 }
 0xed1   :  { %v2802_v19 = vpop.f32.mrf.mxu1 }
 0xed3   :  { %v3386_v21 = vpop.f32.mrf.mxu1 }
 0xed4   :  { %2810 = vsyncpa [#allocation6], 1 }
 0xed5   :  { %2811 = vsyncpa [#allocation8], 1 }
 0xed6   :  { %2812 = vsyncpa [#allocation11], 1 }
 0xed7   :  { %2813 = vsyncpa [#allocation14], 1 }
 0xed8   :  { %2814 = vsyncpa [#allocation17], 1 }
 0xed9   :  { %2815 = vsyncpa [#allocation20], 1 }
 0xeda   :  { %2816 = vsyncpa [#allocation23], 1 }
 0xedb   :  { %2817 = vsyncpa [#allocation26], 1 }

</bundles_post_ra>
